<compile_context>
chip_gen: v7x
topology: tpu7x:2x2x1
jax: 0.10.0
libtpu: 0.0.40
codegen_flags: <defaults>
</compile_context>

<pallas_src>
import functools

import jax
import jax.numpy as jnp
from jax.experimental import pallas as pl
from jax.experimental.pallas import tpu as pltpu


def _attention_kernel(q_ref, ctx_ref, w_in_ref, wo_ctx_ref, wo_q_ref, b_ref,
                      out_ref, attn_ref, *, project_q, flatten_q, flatten_ctx):
    # Per-grid-step views (Bb batch elements):
    #   q_ref     : (Bb, T, D)          ctx_ref   : (Bb, S, 2E)
    #   w_in_ref  : (D, 2E) if project_q else (2E, D)
    #   wo_ctx_ref: (2E, D)             wo_q_ref  : (D, D)      b_ref: (1, D) f32
    #   out_ref   : (T, Bb*D)           attn_ref  : (T, Bb*S)   (lane-dense slabs)
    Bb, T, D = q_ref.shape
    _, S, E2 = ctx_ref.shape

    q = q_ref[...]                    # (Bb, T, D)   compute dtype
    ctx = ctx_ref[...]                # (Bb, S, 2E)
    cdt = ctx.dtype

    # ---- scores = q @ W_in @ ctx^T (association chosen by the wrapper) ----
    if project_q:                     # project the T decoder rows (T <= S)
        w_in = w_in_ref[...]          # (D, 2E)
        if flatten_q:
            q2 = q.reshape(Bb * T, D)
            q_proj = jnp.dot(q2, w_in,
                             preferred_element_type=jnp.float32).reshape(Bb, T, E2)
        else:
            q_proj = jnp.einsum('btd,de->bte', q, w_in,
                                preferred_element_type=jnp.float32)
        scores = jnp.einsum('bte,bse->bts', q_proj.astype(cdt), ctx,
                            preferred_element_type=jnp.float32)      # (Bb,T,S) f32
    else:                             # project the S encoder rows (S < T)
        w_in_t = w_in_ref[...]        # (2E, D)
        if flatten_ctx:
            ctx_proj = jnp.dot(ctx.reshape(Bb * S, E2), w_in_t,
                               preferred_element_type=jnp.float32).reshape(Bb, S, D)
        else:
            ctx_proj = jnp.einsum('bse,ed->bsd', ctx, w_in_t,
                                  preferred_element_type=jnp.float32)
        scores = jnp.einsum('btd,bsd->bts', q, ctx_proj.astype(cdt),
                            preferred_element_type=jnp.float32)      # (Bb,T,S) f32

    # ---- softmax over the encoder (S) axis, all in f32 (VPU/EUP) ----
    m = jnp.max(scores, axis=-1, keepdims=True)
    e = jnp.exp(scores - m)
    denom = jnp.sum(e, axis=-1, keepdims=True)
    attn = e * pl.reciprocal(denom, approx=False)                     # (Bb,T,S) f32

    # ---- weighted context = attn @ ctx (per-batch bmm) ----
    wctx = jnp.einsum('bts,bse->bte', attn.astype(cdt), ctx,
                      preferred_element_type=jnp.float32)             # (Bb,T,2E) f32

    wo_ctx = wo_ctx_ref[...]          # (2E, D)
    wo_q = wo_q_ref[...]              # (D, D)
    bias = b_ref[...]                 # (1, D) f32

    # ---- out = tanh(wctx @ Wo_ctx + q @ Wo_q + b): concat-free projection ----
    if flatten_q:
        q2 = q.reshape(Bb * T, D)
        acc = (jnp.dot(wctx.reshape(Bb * T, E2).astype(cdt), wo_ctx,
                       preferred_element_type=jnp.float32)
               + jnp.dot(q2, wo_q, preferred_element_type=jnp.float32)
               + bias)                                                # (Bb*T, D) f32
        out = jnp.tanh(acc).reshape(Bb, T, D)
    else:
        acc = (jnp.einsum('bte,ed->btd', wctx.astype(cdt), wo_ctx,
                          preferred_element_type=jnp.float32)
               + jnp.einsum('btk,kd->btd', q, wo_q,
                            preferred_element_type=jnp.float32)
               + bias)
        out = jnp.tanh(acc)                                           # (Bb, T, D) f32

    # ---- lane-dense stores: pack the Bb batch elements along the lane axis ----
    attn_o = attn.astype(attn_ref.dtype)
    out_o = out.astype(out_ref.dtype)
    for b in range(Bb):               # static unroll; static lane-offset slices
        attn_ref[:, b * S:(b + 1) * S] = attn_o[b]
        out_ref[:, b * D:(b + 1) * D] = out_o[b]


def _pick_block_batch(B, T, S, D, E2, compute_dtype, out_dtype, block_batch=None):
    """Choose the per-step batch block from a lane-density target and a
    generation-aware VMEM budget; return (Bb, vmem_limit_bytes)."""
    in_bytes = jnp.dtype(compute_dtype).itemsize
    out_bytes = jnp.dtype(out_dtype).itemsize

    try:
        vmem_cap = int(pltpu.get_tpu_info().vmem_capacity_bytes)
    except Exception:
        vmem_cap = 64 * 1024 * 1024          # conservative fallback (v7x physical)
    budget = vmem_cap // 4                   # leave headroom for weights/spills

    def vmem_need(bb):
        # double-buffered input + output blocks, double-buffered weights,
        # plus rough f32 live intermediates inside the body.
        io = (2 * bb * (T * D + S * E2) * in_bytes
              + 2 * bb * T * (D + S) * out_bytes)
        w = 2 * (D * E2 + E2 * D + D * D + D) * in_bytes
        live = 4 * bb * T * (2 * S + 2 * E2 + 2 * D)
        return io + w + live

    if block_batch is not None:
        bb = int(block_batch)
    else:
        # Smallest Bb making the (T, Bb*S)/(T, Bb*D) output slabs lane-dense.
        lane_target = -(-128 // max(1, min(S, D)))
        bb = min(max(1, lane_target), int(pl.next_power_of_2(max(1, B))))
        while bb > 1 and vmem_need(bb) > budget:
            bb //= 2
        # Prefer >= 2 parallel grid steps (both v7x TensorCores) when that
        # does not destroy lane density of the output slabs.
        while bb > 1 and bb >= B and B >= 2 and (bb // 2) * min(S, D) >= 128:
            bb //= 2

    vmem_limit = int(min(int(vmem_cap * 0.9),
                         max(32 * 1024 * 1024, 4 * vmem_need(bb))))
    return bb, vmem_limit


def attention_forward(output, context, mask, w_in, w_out, b_out, *,
                      block_batch=None, mxu_dtype=jnp.bfloat16, out_dtype=None):
    """output: [B,T,D], context: [B,S,2E], mask: [B,T,S] (no-op, see header),
    w_in: [D,2E], w_out: [D,2E+D], b_out: [D]  (torch Linear layout).

    mxu_dtype: dtype of matmul operands (bf16 default; accumulation stays f32).
    out_dtype: dtype of the returned tensors (default: dtype of `output`)."""
    del mask  # reference's masked_fill is out-of-place & discarded -> no-op
    B, T, D = output.shape
    _, S, E2 = context.shape
    assert w_in.shape == (D, E2)
    assert w_out.shape == (D, E2 + D)
    assert b_out.shape == (D,)

    cdt = jnp.dtype(mxu_dtype)
    odt = jnp.dtype(out_dtype) if out_dtype is not None else jnp.dtype(output.dtype)

    # Association: always push min(T, S) rows through W_in.
    project_q = T <= S
    # Sublane count for the compute dtype (8 f32 / 16 bf16 / 32 int8): the
    # (Bb, n, feat) -> (Bb*n, feat) flatten is only a free relayout when the
    # collapsed axis is sublane-aligned.
    sub = max(8, 32 // cdt.itemsize)
    flatten_q = (T % sub == 0)
    flatten_ctx = (S % sub == 0)

    Bb, vmem_limit = _pick_block_batch(B, T, S, D, E2, cdt, odt, block_batch)
    G = pl.cdiv(B, Bb)
    B_pad = G * Bb

    # Glue: cast MXU operands, pad the batch to a multiple of Bb, pre-orient
    # weights so the kernel only does plain row-major matmuls (no concat).
    q_in = jnp.asarray(output, cdt)                       # (B, T, D)
    ctx_in = jnp.asarray(context, cdt)                    # (B, S, 2E)
    if B_pad != B:
        q_in = jnp.pad(q_in, ((0, B_pad - B), (0, 0), (0, 0)))
        ctx_in = jnp.pad(ctx_in, ((0, B_pad - B), (0, 0), (0, 0)))
    w_in_k = jnp.asarray(w_in, cdt) if project_q else jnp.asarray(w_in, cdt).T
    wo_ctx_t = jnp.asarray(w_out[:, :E2], cdt).T          # (2E, D)
    wo_q_t = jnp.asarray(w_out[:, E2:], cdt).T            # (D, D)
    b2d = jnp.asarray(b_out, jnp.float32).reshape(1, D)

    kernel = functools.partial(_attention_kernel, project_q=project_q,
                               flatten_q=flatten_q, flatten_ctx=flatten_ctx)

    grid_spec = pltpu.PrefetchScalarGridSpec(
        num_scalar_prefetch=0,
        grid=(G,),
        in_specs=[
            pl.BlockSpec((Bb, T, D), lambda g: (g, 0, 0)),
            pl.BlockSpec((Bb, S, E2), lambda g: (g, 0, 0)),
            pl.BlockSpec(w_in_k.shape, lambda g: (0, 0)),
            pl.BlockSpec((E2, D), lambda g: (0, 0)),
            pl.BlockSpec((D, D), lambda g: (0, 0)),
            pl.BlockSpec((1, D), lambda g: (0, 0)),
        ],
        out_specs=[
            pl.BlockSpec((None, T, Bb * D), lambda g: (g, 0, 0)),  # lane-dense out
            pl.BlockSpec((None, T, Bb * S), lambda g: (g, 0, 0)),  # lane-dense attn
        ],
    )

    out_dense, attn_dense = pl.pallas_call(
        kernel,
        out_shape=(
            jax.ShapeDtypeStruct((G, T, Bb * D), odt),
            jax.ShapeDtypeStruct((G, T, Bb * S), odt),
        ),
        grid_spec=grid_spec,
        compiler_params=pltpu.CompilerParams(
            dimension_semantics=("parallel",),
            vmem_limit_bytes=vmem_limit),
    )(q_in, ctx_in, w_in_k, wo_ctx_t, wo_q_t, b2d)

    # Wrapper-side layout plumbing: unpack the lane-dense slabs and drop padding.
    out = (out_dense.reshape(G, T, Bb, D).transpose(0, 2, 1, 3)
           .reshape(B_pad, T, D)[:B])
    attn = (attn_dense.reshape(G, T, Bb, S).transpose(0, 2, 1, 3)
            .reshape(B_pad, T, S)[:B])
    return out, attn


def _reference(output, context, mask, w_in, w_out, b_out):
    # Pure-JAX reference mirroring the PyTorch forward (mask is a no-op there).
    del mask
    ctx_in = jnp.einsum('bse,de->bsd', context, w_in)
    attn = jnp.einsum('btd,bsd->bts', output, ctx_in)
    attn = jax.nn.softmax(attn, axis=2)
    wctx = jnp.einsum('bts,bse->bte', attn, context)
    cat = jnp.concatenate([wctx, output], axis=2)
    out = jnp.tanh(jnp.einsum('btf,df->btd', cat, w_out) + b_out)
    return out, attn


def _run_case(B, T, S, E, D, mxu_dtype, out_dtype, tol, tag):
    E2 = 2 * E
    key = jax.random.PRNGKey(0)
    k1, k2, k3, k4, k5, k6 = jax.random.split(key, 6)

    output = jax.random.normal(k1, (B, T, D), jnp.float32)
    context = jax.random.normal(k2, (B, S, E2), jnp.float32)
    mask = jax.random.uniform(k3, (B, T, S)) > 0.8

    # Deterministic parameter init (PyTorch Linear-style uniform bounds).
    bound_in = 1.0 / (E2 ** 0.5)
    bound_out = 1.0 / ((E2 + D) ** 0.5)
    w_in = jax.random.uniform(k4, (D, E2), jnp.float32, -bound_in, bound_in)
    w_out = jax.random.uniform(k5, (D, E2 + D), jnp.float32, -bound_out, bound_out)
    b_out = jax.random.uniform(k6, (D,), jnp.float32, -bound_out, bound_out)

    out, attn = attention_forward(output, context, mask, w_in, w_out, b_out,
                                  mxu_dtype=mxu_dtype, out_dtype=out_dtype)
    jax.block_until_ready((out, attn))

    ref_out, ref_attn = _reference(output, context, mask, w_in, w_out, b_out)
    assert out.shape == (B, T, D) and attn.shape == (B, T, S), tag
    assert jnp.allclose(out.astype(jnp.float32), ref_out, atol=tol, rtol=tol), tag
    assert jnp.allclose(attn.astype(jnp.float32), ref_attn, atol=tol, rtol=tol), tag


if __name__ == "__main__":
    # f32 MXU operands: tight check.  B=16, S=16, D=32 -> Bb=8, so the output
    # slabs are (8, 256)/(8, 128) lane-dense and the grid has 2 parallel steps.
    _run_case(B=16, T=8, S=16, E=16, D=32,
              mxu_dtype=jnp.float32, out_dtype=None, tol=1e-5, tag="f32")
    # bf16 MXU operands + bf16 outputs (v5e/v6e/v7x fast path): relaxed check.
    _run_case(B=16, T=8, S=16, E=16, D=32,
              mxu_dtype=jnp.bfloat16, out_dtype=jnp.bfloat16, tol=6e-2, tag="bf16")
    # Odd batch (exercises padding) and T > S (exercises the project-ctx path).
    _run_case(B=3, T=16, S=8, E=16, D=32,
              mxu_dtype=jnp.float32, out_dtype=None, tol=1e-5, tag="pad/T>S")

    print("KERNEL_OK")
</pallas_src>

<mosaic_0001>
module attributes {stable_mosaic.version = 11 : i64} {
  func.func @_attention_kernel(%arg0: i32, %arg1: memref<8x8x32xf32, #tpu.memory_space<vmem>>, %arg2: memref<8x16x32xf32, #tpu.memory_space<vmem>>, %arg3: memref<32x32xf32, #tpu.memory_space<vmem>>, %arg4: memref<32x32xf32, #tpu.memory_space<vmem>>, %arg5: memref<32x32xf32, #tpu.memory_space<vmem>>, %arg6: memref<1x32xf32, #tpu.memory_space<vmem>>, %arg7: memref<1x8x256xf32, #tpu.memory_space<vmem>>, %arg8: memref<1x8x128xf32, #tpu.memory_space<vmem>>) attributes {dimension_semantics = [#tpu.dimension_semantics<parallel>], iteration_bounds = array<i64: 2>, scalar_prefetch = 0 : i64, scratch_operands = 0 : i64, tpu.core_type = #tpu.core_type<tc>, window_params = [{transform_indices = @transform_0, window_bounds = array<i64: 8, 8, 32>}, {transform_indices = @transform_1, window_bounds = array<i64: 8, 16, 32>}, {pipeline_mode = #tpu.pipeline_mode<synchronous>, transform_indices = @transform_2, window_bounds = array<i64: 32, 32>}, {pipeline_mode = #tpu.pipeline_mode<synchronous>, transform_indices = @transform_3, window_bounds = array<i64: 32, 32>}, {pipeline_mode = #tpu.pipeline_mode<synchronous>, transform_indices = @transform_4, window_bounds = array<i64: 32, 32>}, {pipeline_mode = #tpu.pipeline_mode<synchronous>, transform_indices = @transform_5, window_bounds = array<i64: 1, 32>}, {transform_indices = @transform_6, window_bounds = array<i64: 1, 8, 256>}, {transform_indices = @transform_7, window_bounds = array<i64: 1, 8, 128>}]} {
    %c0 = arith.constant 0 : index
    %c0_0 = arith.constant 0 : index
    %c0_1 = arith.constant 0 : index
    %0 = vector.load %arg1[%c0, %c0_0, %c0_1] : memref<8x8x32xf32, #tpu.memory_space<vmem>>, vector<8x8x32xf32>
    %c0_2 = arith.constant 0 : index
    %c0_3 = arith.constant 0 : index
    %c0_4 = arith.constant 0 : index
    %1 = vector.load %arg2[%c0_2, %c0_3, %c0_4] : memref<8x16x32xf32, #tpu.memory_space<vmem>>, vector<8x16x32xf32>
    %c0_5 = arith.constant 0 : index
    %c0_6 = arith.constant 0 : index
    %2 = vector.load %arg3[%c0_5, %c0_6] : memref<32x32xf32, #tpu.memory_space<vmem>>, vector<32x32xf32>
    %3 = vector.shape_cast %0 : vector<8x8x32xf32> to vector<64x32xf32>
    %cst = arith.constant dense<0.000000e+00> : vector<64x32xf32>
    %4 = tpu.matmul %3, %2, %cst {dimension_numbers = #tpu.dot_dimension_numbers<[1], [0], [0], [1], [0, 0, 1, 1], [], []>} : vector<64x32xf32>, vector<32x32xf32>, vector<64x32xf32> -> vector<64x32xf32>
    %5 = vector.shape_cast %4 : vector<64x32xf32> to vector<8x8x32xf32>
    "tpu.trace_start"() <{level = 10 : i32, message = "bte,bse->bts"}> : () -> ()
    %cst_7 = arith.constant dense<0.000000e+00> : vector<8x8x16xf32>
    %6 = tpu.matmul %5, %1, %cst_7 {dimension_numbers = #tpu.dot_dimension_numbers<[2], [2], [1], [1], [0, 0, 0, 1, 1, 1], [0], [0]>} : vector<8x8x32xf32>, vector<8x16x32xf32>, vector<8x8x16xf32> -> vector<8x8x16xf32>
    "tpu.trace_stop"() : () -> ()
    %cst_8 = arith.constant dense<0xFF800000> : vector<8x8xf32>
    %7 = vector.multi_reduction <maximumf>, %6, %cst_8 [2] : vector<8x8x16xf32> to vector<8x8xf32>
    %8 = vector.shape_cast %7 : vector<8x8xf32> to vector<8x8x1xf32>
    %9 = vector.broadcast %8 : vector<8x8x1xf32> to vector<8x8x16xf32>
    %10 = arith.subf %6, %9 : vector<8x8x16xf32>
    %11 = math.exp %10 : vector<8x8x16xf32>
    %cst_9 = arith.constant dense<0.000000e+00> : vector<8x8xf32>
    %12 = vector.multi_reduction <add>, %11, %cst_9 [2] : vector<8x8x16xf32> to vector<8x8xf32>
    %13 = vector.shape_cast %12 : vector<8x8xf32> to vector<8x8x1xf32>
    %14 = tpu.reciprocal %13 : vector<8x8x1xf32> -> vector<8x8x1xf32>
    %15 = vector.broadcast %14 : vector<8x8x1xf32> to vector<8x8x16xf32>
    %16 = arith.mulf %11, %15 : vector<8x8x16xf32>
    "tpu.trace_start"() <{level = 10 : i32, message = "bts,bse->bte"}> : () -> ()
    %cst_10 = arith.constant dense<0.000000e+00> : vector<8x8x32xf32>
    %17 = tpu.matmul %16, %1, %cst_10 {dimension_numbers = #tpu.dot_dimension_numbers<[2], [1], [1], [2], [0, 0, 0, 1, 1, 2], [0], [0]>} : vector<8x8x16xf32>, vector<8x16x32xf32>, vector<8x8x32xf32> -> vector<8x8x32xf32>
    "tpu.trace_stop"() : () -> ()
    %c0_11 = arith.constant 0 : index
    %c0_12 = arith.constant 0 : index
    %18 = vector.load %arg4[%c0_11, %c0_12] : memref<32x32xf32, #tpu.memory_space<vmem>>, vector<32x32xf32>
    %c0_13 = arith.constant 0 : index
    %c0_14 = arith.constant 0 : index
    %19 = vector.load %arg5[%c0_13, %c0_14] : memref<32x32xf32, #tpu.memory_space<vmem>>, vector<32x32xf32>
    %c0_15 = arith.constant 0 : index
    %c0_16 = arith.constant 0 : index
    %20 = vector.load %arg6[%c0_15, %c0_16] : memref<1x32xf32, #tpu.memory_space<vmem>>, vector<1x32xf32>
    %21 = vector.shape_cast %0 : vector<8x8x32xf32> to vector<64x32xf32>
    %22 = vector.shape_cast %17 : vector<8x8x32xf32> to vector<64x32xf32>
    %cst_17 = arith.constant dense<0.000000e+00> : vector<64x32xf32>
    %23 = tpu.matmul %22, %18, %cst_17 {dimension_numbers = #tpu.dot_dimension_numbers<[1], [0], [0], [1], [0, 0, 1, 1], [], []>} : vector<64x32xf32>, vector<32x32xf32>, vector<64x32xf32> -> vector<64x32xf32>
    %cst_18 = arith.constant dense<0.000000e+00> : vector<64x32xf32>
    %24 = tpu.matmul %21, %19, %cst_18 {dimension_numbers = #tpu.dot_dimension_numbers<[1], [0], [0], [1], [0, 0, 1, 1], [], []>} : vector<64x32xf32>, vector<32x32xf32>, vector<64x32xf32> -> vector<64x32xf32>
    %25 = arith.addf %23, %24 : vector<64x32xf32>
    %26 = vector.broadcast %20 : vector<1x32xf32> to vector<64x32xf32>
    %27 = arith.addf %25, %26 : vector<64x32xf32>
    %28 = math.tanh %27 : vector<64x32xf32>
    %29 = vector.shape_cast %28 : vector<64x32xf32> to vector<8x8x32xf32>
    %30 = vector.extract_strided_slice %16 {offsets = [0, 0, 0], sizes = [1, 8, 16], strides = [1, 1, 1]} : vector<8x8x16xf32> to vector<1x8x16xf32>
    %31 = vector.shape_cast %30 : vector<1x8x16xf32> to vector<8x16xf32>
    %c0_19 = arith.constant 0 : index
    %c0_20 = arith.constant 0 : index
    %c0_21 = arith.constant 0 : index
    %32 = vector.load %arg8[%c0_19, %c0_20, %c0_21] : memref<1x8x128xf32, #tpu.memory_space<vmem>>, vector<1x8x16xf32>
    %33 = vector.shape_cast %32 : vector<1x8x16xf32> to vector<8x16xf32>
    %34 = vector.shape_cast %31 : vector<8x16xf32> to vector<1x8x16xf32>
    tpu.vector_store %arg8[%c0_19, %c0_20, %c0_21], %34 {strides = array<i32>} : memref<1x8x128xf32, #tpu.memory_space<vmem>>, vector<1x8x16xf32>,
    %35 = vector.extract_strided_slice %29 {offsets = [0, 0, 0], sizes = [1, 8, 32], strides = [1, 1, 1]} : vector<8x8x32xf32> to vector<1x8x32xf32>
    %36 = vector.shape_cast %35 : vector<1x8x32xf32> to vector<8x32xf32>
    %c0_22 = arith.constant 0 : index
    %c0_23 = arith.constant 0 : index
    %c0_24 = arith.constant 0 : index
    %37 = vector.load %arg7[%c0_22, %c0_23, %c0_24] : memref<1x8x256xf32, #tpu.memory_space<vmem>>, vector<1x8x32xf32>
    %38 = vector.shape_cast %37 : vector<1x8x32xf32> to vector<8x32xf32>
    %39 = vector.shape_cast %36 : vector<8x32xf32> to vector<1x8x32xf32>
    tpu.vector_store %arg7[%c0_22, %c0_23, %c0_24], %39 {strides = array<i32>} : memref<1x8x256xf32, #tpu.memory_space<vmem>>, vector<1x8x32xf32>,
    %40 = vector.extract_strided_slice %16 {offsets = [1, 0, 0], sizes = [1, 8, 16], strides = [1, 1, 1]} : vector<8x8x16xf32> to vector<1x8x16xf32>
    %41 = vector.shape_cast %40 : vector<1x8x16xf32> to vector<8x16xf32>
    %c0_25 = arith.constant 0 : index
    %c0_26 = arith.constant 0 : index
    %c16 = arith.constant 16 : index
    %42 = vector.load %arg8[%c0_25, %c0_26, %c16] : memref<1x8x128xf32, #tpu.memory_space<vmem>>, vector<1x8x16xf32>
    %43 = vector.shape_cast %42 : vector<1x8x16xf32> to vector<8x16xf32>
    %44 = vector.shape_cast %41 : vector<8x16xf32> to vector<1x8x16xf32>
    tpu.vector_store %arg8[%c0_25, %c0_26, %c16], %44 {strides = array<i32>} : memref<1x8x128xf32, #tpu.memory_space<vmem>>, vector<1x8x16xf32>,
    %45 = vector.extract_strided_slice %29 {offsets = [1, 0, 0], sizes = [1, 8, 32], strides = [1, 1, 1]} : vector<8x8x32xf32> to vector<1x8x32xf32>
    %46 = vector.shape_cast %45 : vector<1x8x32xf32> to vector<8x32xf32>
    %c0_27 = arith.constant 0 : index
    %c0_28 = arith.constant 0 : index
    %c32 = arith.constant 32 : index
    %47 = vector.load %arg7[%c0_27, %c0_28, %c32] : memref<1x8x256xf32, #tpu.memory_space<vmem>>, vector<1x8x32xf32>
    %48 = vector.shape_cast %47 : vector<1x8x32xf32> to vector<8x32xf32>
    %49 = vector.shape_cast %46 : vector<8x32xf32> to vector<1x8x32xf32>
    tpu.vector_store %arg7[%c0_27, %c0_28, %c32], %49 {strides = array<i32>} : memref<1x8x256xf32, #tpu.memory_space<vmem>>, vector<1x8x32xf32>,
    %50 = vector.extract_strided_slice %16 {offsets = [2, 0, 0], sizes = [1, 8, 16], strides = [1, 1, 1]} : vector<8x8x16xf32> to vector<1x8x16xf32>
    %51 = vector.shape_cast %50 : vector<1x8x16xf32> to vector<8x16xf32>
    %c0_29 = arith.constant 0 : index
    %c0_30 = arith.constant 0 : index
    %c32_31 = arith.constant 32 : index
    %52 = vector.load %arg8[%c0_29, %c0_30, %c32_31] : memref<1x8x128xf32, #tpu.memory_space<vmem>>, vector<1x8x16xf32>
    %53 = vector.shape_cast %52 : vector<1x8x16xf32> to vector<8x16xf32>
    %54 = vector.shape_cast %51 : vector<8x16xf32> to vector<1x8x16xf32>
    tpu.vector_store %arg8[%c0_29, %c0_30, %c32_31], %54 {strides = array<i32>} : memref<1x8x128xf32, #tpu.memory_space<vmem>>, vector<1x8x16xf32>,
    %55 = vector.extract_strided_slice %29 {offsets = [2, 0, 0], sizes = [1, 8, 32], strides = [1, 1, 1]} : vector<8x8x32xf32> to vector<1x8x32xf32>
    %56 = vector.shape_cast %55 : vector<1x8x32xf32> to vector<8x32xf32>
    %c0_32 = arith.constant 0 : index
    %c0_33 = arith.constant 0 : index
    %c64 = arith.constant 64 : index
    %57 = vector.load %arg7[%c0_32, %c0_33, %c64] : memref<1x8x256xf32, #tpu.memory_space<vmem>>, vector<1x8x32xf32>
    %58 = vector.shape_cast %57 : vector<1x8x32xf32> to vector<8x32xf32>
    %59 = vector.shape_cast %56 : vector<8x32xf32> to vector<1x8x32xf32>
    tpu.vector_store %arg7[%c0_32, %c0_33, %c64], %59 {strides = array<i32>} : memref<1x8x256xf32, #tpu.memory_space<vmem>>, vector<1x8x32xf32>,
    %60 = vector.extract_strided_slice %16 {offsets = [3, 0, 0], sizes = [1, 8, 16], strides = [1, 1, 1]} : vector<8x8x16xf32> to vector<1x8x16xf32>
    %61 = vector.shape_cast %60 : vector<1x8x16xf32> to vector<8x16xf32>
    %c0_34 = arith.constant 0 : index
    %c0_35 = arith.constant 0 : index
    %c48 = arith.constant 48 : index
    %62 = vector.load %arg8[%c0_34, %c0_35, %c48] : memref<1x8x128xf32, #tpu.memory_space<vmem>>, vector<1x8x16xf32>
    %63 = vector.shape_cast %62 : vector<1x8x16xf32> to vector<8x16xf32>
    %64 = vector.shape_cast %61 : vector<8x16xf32> to vector<1x8x16xf32>
    tpu.vector_store %arg8[%c0_34, %c0_35, %c48], %64 {strides = array<i32>} : memref<1x8x128xf32, #tpu.memory_space<vmem>>, vector<1x8x16xf32>,
    %65 = vector.extract_strided_slice %29 {offsets = [3, 0, 0], sizes = [1, 8, 32], strides = [1, 1, 1]} : vector<8x8x32xf32> to vector<1x8x32xf32>
    %66 = vector.shape_cast %65 : vector<1x8x32xf32> to vector<8x32xf32>
    %c0_36 = arith.constant 0 : index
    %c0_37 = arith.constant 0 : index
    %c96 = arith.constant 96 : index
    %67 = vector.load %arg7[%c0_36, %c0_37, %c96] : memref<1x8x256xf32, #tpu.memory_space<vmem>>, vector<1x8x32xf32>
    %68 = vector.shape_cast %67 : vector<1x8x32xf32> to vector<8x32xf32>
    %69 = vector.shape_cast %66 : vector<8x32xf32> to vector<1x8x32xf32>
    tpu.vector_store %arg7[%c0_36, %c0_37, %c96], %69 {strides = array<i32>} : memref<1x8x256xf32, #tpu.memory_space<vmem>>, vector<1x8x32xf32>,
    %70 = vector.extract_strided_slice %16 {offsets = [4, 0, 0], sizes = [1, 8, 16], strides = [1, 1, 1]} : vector<8x8x16xf32> to vector<1x8x16xf32>
    %71 = vector.shape_cast %70 : vector<1x8x16xf32> to vector<8x16xf32>
    %c0_38 = arith.constant 0 : index
    %c0_39 = arith.constant 0 : index
    %c64_40 = arith.constant 64 : index
    %72 = vector.load %arg8[%c0_38, %c0_39, %c64_40] : memref<1x8x128xf32, #tpu.memory_space<vmem>>, vector<1x8x16xf32>
    %73 = vector.shape_cast %72 : vector<1x8x16xf32> to vector<8x16xf32>
    %74 = vector.shape_cast %71 : vector<8x16xf32> to vector<1x8x16xf32>
    tpu.vector_store %arg8[%c0_38, %c0_39, %c64_40], %74 {strides = array<i32>} : memref<1x8x128xf32, #tpu.memory_space<vmem>>, vector<1x8x16xf32>,
    %75 = vector.extract_strided_slice %29 {offsets = [4, 0, 0], sizes = [1, 8, 32], strides = [1, 1, 1]} : vector<8x8x32xf32> to vector<1x8x32xf32>
    %76 = vector.shape_cast %75 : vector<1x8x32xf32> to vector<8x32xf32>
    %c0_41 = arith.constant 0 : index
    %c0_42 = arith.constant 0 : index
    %c128 = arith.constant 128 : index
    %77 = vector.load %arg7[%c0_41, %c0_42, %c128] : memref<1x8x256xf32, #tpu.memory_space<vmem>>, vector<1x8x32xf32>
    %78 = vector.shape_cast %77 : vector<1x8x32xf32> to vector<8x32xf32>
    %79 = vector.shape_cast %76 : vector<8x32xf32> to vector<1x8x32xf32>
    tpu.vector_store %arg7[%c0_41, %c0_42, %c128], %79 {strides = array<i32>} : memref<1x8x256xf32, #tpu.memory_space<vmem>>, vector<1x8x32xf32>,
    %80 = vector.extract_strided_slice %16 {offsets = [5, 0, 0], sizes = [1, 8, 16], strides = [1, 1, 1]} : vector<8x8x16xf32> to vector<1x8x16xf32>
    %81 = vector.shape_cast %80 : vector<1x8x16xf32> to vector<8x16xf32>
    %c0_43 = arith.constant 0 : index
    %c0_44 = arith.constant 0 : index
    %c80 = arith.constant 80 : index
    %82 = vector.load %arg8[%c0_43, %c0_44, %c80] : memref<1x8x128xf32, #tpu.memory_space<vmem>>, vector<1x8x16xf32>
    %83 = vector.shape_cast %82 : vector<1x8x16xf32> to vector<8x16xf32>
    %84 = vector.shape_cast %81 : vector<8x16xf32> to vector<1x8x16xf32>
    tpu.vector_store %arg8[%c0_43, %c0_44, %c80], %84 {strides = array<i32>} : memref<1x8x128xf32, #tpu.memory_space<vmem>>, vector<1x8x16xf32>,
    %85 = vector.extract_strided_slice %29 {offsets = [5, 0, 0], sizes = [1, 8, 32], strides = [1, 1, 1]} : vector<8x8x32xf32> to vector<1x8x32xf32>
    %86 = vector.shape_cast %85 : vector<1x8x32xf32> to vector<8x32xf32>
    %c0_45 = arith.constant 0 : index
    %c0_46 = arith.constant 0 : index
    %c160 = arith.constant 160 : index
    %87 = vector.load %arg7[%c0_45, %c0_46, %c160] : memref<1x8x256xf32, #tpu.memory_space<vmem>>, vector<1x8x32xf32>
    %88 = vector.shape_cast %87 : vector<1x8x32xf32> to vector<8x32xf32>
    %89 = vector.shape_cast %86 : vector<8x32xf32> to vector<1x8x32xf32>
    tpu.vector_store %arg7[%c0_45, %c0_46, %c160], %89 {strides = array<i32>} : memref<1x8x256xf32, #tpu.memory_space<vmem>>, vector<1x8x32xf32>,
    %90 = vector.extract_strided_slice %16 {offsets = [6, 0, 0], sizes = [1, 8, 16], strides = [1, 1, 1]} : vector<8x8x16xf32> to vector<1x8x16xf32>
    %91 = vector.shape_cast %90 : vector<1x8x16xf32> to vector<8x16xf32>
    %c0_47 = arith.constant 0 : index
    %c0_48 = arith.constant 0 : index
    %c96_49 = arith.constant 96 : index
    %92 = vector.load %arg8[%c0_47, %c0_48, %c96_49] : memref<1x8x128xf32, #tpu.memory_space<vmem>>, vector<1x8x16xf32>
    %93 = vector.shape_cast %92 : vector<1x8x16xf32> to vector<8x16xf32>
    %94 = vector.shape_cast %91 : vector<8x16xf32> to vector<1x8x16xf32>
    tpu.vector_store %arg8[%c0_47, %c0_48, %c96_49], %94 {strides = array<i32>} : memref<1x8x128xf32, #tpu.memory_space<vmem>>, vector<1x8x16xf32>,
    %95 = vector.extract_strided_slice %29 {offsets = [6, 0, 0], sizes = [1, 8, 32], strides = [1, 1, 1]} : vector<8x8x32xf32> to vector<1x8x32xf32>
    %96 = vector.shape_cast %95 : vector<1x8x32xf32> to vector<8x32xf32>
    %c0_50 = arith.constant 0 : index
    %c0_51 = arith.constant 0 : index
    %c192 = arith.constant 192 : index
    %97 = vector.load %arg7[%c0_50, %c0_51, %c192] : memref<1x8x256xf32, #tpu.memory_space<vmem>>, vector<1x8x32xf32>
    %98 = vector.shape_cast %97 : vector<1x8x32xf32> to vector<8x32xf32>
    %99 = vector.shape_cast %96 : vector<8x32xf32> to vector<1x8x32xf32>
    tpu.vector_store %arg7[%c0_50, %c0_51, %c192], %99 {strides = array<i32>} : memref<1x8x256xf32, #tpu.memory_space<vmem>>, vector<1x8x32xf32>,
    %100 = vector.extract_strided_slice %16 {offsets = [7, 0, 0], sizes = [1, 8, 16], strides = [1, 1, 1]} : vector<8x8x16xf32> to vector<1x8x16xf32>
    %101 = vector.shape_cast %100 : vector<1x8x16xf32> to vector<8x16xf32>
    %c0_52 = arith.constant 0 : index
    %c0_53 = arith.constant 0 : index
    %c112 = arith.constant 112 : index
    %102 = vector.load %arg8[%c0_52, %c0_53, %c112] : memref<1x8x128xf32, #tpu.memory_space<vmem>>, vector<1x8x16xf32>
    %103 = vector.shape_cast %102 : vector<1x8x16xf32> to vector<8x16xf32>
    %104 = vector.shape_cast %101 : vector<8x16xf32> to vector<1x8x16xf32>
    tpu.vector_store %arg8[%c0_52, %c0_53, %c112], %104 {strides = array<i32>} : memref<1x8x128xf32, #tpu.memory_space<vmem>>, vector<1x8x16xf32>,
    %105 = vector.extract_strided_slice %29 {offsets = [7, 0, 0], sizes = [1, 8, 32], strides = [1, 1, 1]} : vector<8x8x32xf32> to vector<1x8x32xf32>
    %106 = vector.shape_cast %105 : vector<1x8x32xf32> to vector<8x32xf32>
    %c0_54 = arith.constant 0 : index
    %c0_55 = arith.constant 0 : index
    %c224 = arith.constant 224 : index
    %107 = vector.load %arg7[%c0_54, %c0_55, %c224] : memref<1x8x256xf32, #tpu.memory_space<vmem>>, vector<1x8x32xf32>
    %108 = vector.shape_cast %107 : vector<1x8x32xf32> to vector<8x32xf32>
    %109 = vector.shape_cast %106 : vector<8x32xf32> to vector<1x8x32xf32>
    tpu.vector_store %arg7[%c0_54, %c0_55, %c224], %109 {strides = array<i32>} : memref<1x8x256xf32, #tpu.memory_space<vmem>>, vector<1x8x32xf32>,
    return
  }
  func.func @transform_0(%arg0: i32) -> (i32, i32, i32) {
    %c0_i32 = arith.constant 0 : i32
    %c0_i32_0 = arith.constant 0 : i32
    %c0_i32_1 = arith.constant 0 : i32
    return %arg0, %c0_i32, %c0_i32_0 : i32, i32, i32
  }
  func.func @transform_1(%arg0: i32) -> (i32, i32, i32) {
    %c0_i32 = arith.constant 0 : i32
    %c0_i32_0 = arith.constant 0 : i32
    %c0_i32_1 = arith.constant 0 : i32
    return %arg0, %c0_i32, %c0_i32_0 : i32, i32, i32
  }
  func.func @transform_2(%arg0: i32) -> (i32, i32) {
    %c0_i32 = arith.constant 0 : i32
    %c0_i32_0 = arith.constant 0 : i32
    %c0_i32_1 = arith.constant 0 : i32
    return %c0_i32, %c0_i32_0 : i32, i32
  }
  func.func @transform_3(%arg0: i32) -> (i32, i32) {
    %c0_i32 = arith.constant 0 : i32
    %c0_i32_0 = arith.constant 0 : i32
    %c0_i32_1 = arith.constant 0 : i32
    return %c0_i32, %c0_i32_0 : i32, i32
  }
  func.func @transform_4(%arg0: i32) -> (i32, i32) {
    %c0_i32 = arith.constant 0 : i32
    %c0_i32_0 = arith.constant 0 : i32
    %c0_i32_1 = arith.constant 0 : i32
    return %c0_i32, %c0_i32_0 : i32, i32
  }
  func.func @transform_5(%arg0: i32) -> (i32, i32) {
    %c0_i32 = arith.constant 0 : i32
    %c0_i32_0 = arith.constant 0 : i32
    %c0_i32_1 = arith.constant 0 : i32
    return %c0_i32, %c0_i32_0 : i32, i32
  }
  func.func @transform_6(%arg0: i32) -> (i32, i32, i32) {
    %c0_i32 = arith.constant 0 : i32
    %c0_i32_0 = arith.constant 0 : i32
    %c0_i32_1 = arith.constant 0 : i32
    return %arg0, %c0_i32, %c0_i32_0 : i32, i32, i32
  }
  func.func @transform_7(%arg0: i32) -> (i32, i32, i32) {
    %c0_i32 = arith.constant 0 : i32
    %c0_i32_0 = arith.constant 0 : i32
    %c0_i32_1 = arith.constant 0 : i32
    return %arg0, %c0_i32, %c0_i32_0 : i32, i32, i32
  }
}

</mosaic_0001>

<bundles_post_ra>
// kernel: tpu_custom_call.1
= control target key start
LH: loop header
LB: loop body
LE: loop exit
PB: predicated region body
PF: predicated region fallthrough
CT: control target
= control target key end

     0   :  { %s3897_s0 = inlined_call_operand.hbm [shape: f32[16,8,32], index: 0, kind: input, shape index: {}]   ;;  %s3898_s1 = inlined_call_operand.hbm [shape: f32[16,16,32], index: 1, kind: input, shape index: {}]   ;;  %s3899_s2 = inlined_call_operand.hbm [shape: f32[32,32], index: 2, kind: input, shape index: {}]   ;;  %s3900_s3 = inlined_call_operand.hbm [shape: f32[32,32], index: 3, kind: input, shape index: {}]   ;;  %s3901_s4 = inlined_call_operand.hbm [shape: f32[32,32], index: 4, kind: input, shape index: {}]   ;;  %s3902_s5 = inlined_call_operand.vmem [shape: f32[1,32], index: 5, kind: input, shape index: {}]   ;;  %s3903_s6 = inlined_call_operand.hbm [shape: f32[2,8,256], index: 6, kind: output, shape index: {0}]   ;;  %s3904_s7 = inlined_call_operand.hbm [shape: f32[2,8,128], index: 7, kind: output, shape index: {1}]  }
   0x1   :  { %3911 = sst [smem:[#allocation21_spill]] %s3897_s0 }
   0x2   :  { %3912 = sst [smem:[#allocation22_spill]] %s3899_s2 }
   0x3   :  { %3913 = sst [smem:[#allocation23_spill]] %s3900_s3 }
   0x4   :  { %3914 = sst [smem:[#allocation24_spill]] %s3901_s4 }
   0x5   :  { %13 = vsyncpa [#allocation3], 0 }
   0x6   :  { %15 = vsyncpa [#allocation3 + $0x1], 0 }
   0x7   :  { %16 = vsyncpa [#allocation6], 0 }
   0x8   :  { %18 = vsyncpa [#allocation6 + $0x1], 0 }
   0x9   :  { %19 = vsyncpa [#allocation9], 0 }
   0xa   :  { %20 = vsyncpa [#allocation4], 0 }
   0xb   :  { %22 = vsyncpa [#allocation4 + $0x1], 0 }
   0xc   :  { %23 = vsyncpa [#allocation13], 0 }
   0xd   :  { %25 = vsyncpa [#allocation13 + $0x1], 0  ;;  %s3274_s24 = smov 0   ;;  %s3276_s25 = smov 0  }
   0xe   :  { %s3278_s26 = smov 0   ;;  %s3280_s27 = smov 0  }
   0xf LB: > { %s3295_s28 = sadd.s32 4294967295, %s3213_s27   ;;  %s2379_s29 = sadd.s32 4294967294, %s3213_s27   ;;  %s3213_s27 = sphi %s3280_s27, %s3944_s27   ;;  %s3209_s26 = sphi %s3278_s26, %s3943_s26   ;;  %s3205_s25 = sphi %s3276_s25, %s3942_s25   ;;  %s3201_s24 = sphi %s3274_s24, %s3941_s24  }
  0x10   : > { %p51_p0 = scmp.ne.s32.totalorder %s3205_s25, %s3201_s24  ;;  %p3905_p1 = scmp.eq.s32.totalorder %s3295_s28, 0 }
  0x11   : > { %p191_p3 = scmp.eq.s32.totalorder %s2379_s29, 1  ;;  %p2380_p5 = scmp.ge.s32.totalorder %s3213_s27, 1 }
  0x12   : > { %p3304_p4 = por %p3905_p1, %p51_p0  ;;  %p224_p7 = scmp.lt.s32.totalorder %s3213_s27, 3 }
  0x13   : > { %p3309_p6 = por %p191_p3, %p51_p0  ;;  %s3215_s10 = smov [#allocation7]  }
  0x14   : > { %s3915_s30 = scalar_select %p3304_p4, 1, 0 }
  0x15   : > { %s3916_s8 = scalar_select %p3309_p6, 1, 0 }
  0x16   : > { %p3314_p8 = pnand %p2380_p5, %p224_p7  ;;  %s236_s11 = sshll.u32 %s3215_s10, 4  ;;  %s3318_s11 = int_to_ptr.vmem [resolvable:$true] %s236_s11 }
  0x17   : > { %3917 = sst [smem:[#allocation20_spill]] %s3916_s8  ;;  %s3216_s13 = smov [#allocation8]  }
  0x18   : > { %s3918_s9 = scalar_select %p3314_p8, 1, 0 }
  0x19   : > { %p2832_p9 = pneg %p3314_p8  ;;  %s249_s14 = sshll.u32 %s3216_s13, 4  ;;  %s3329_s14 = int_to_ptr.vmem [resolvable:$true] %s249_s14 }
  0x1a   : > { %s3217_s15 = smov [#allocation10]   ;;  %s3920_s2 = sld [smem:[#allocation22_spill]] }
  0x1b   : > { %p3325_p11 = pnand %p2832_p9, %p3905_p1  ;;  %s3331_s16 = sshll.u32 %s3217_s15, 4  ;;  %s263_s16 = int_to_ptr.vmem [resolvable:$true] %s3331_s16 }
  0x1d   : > { %p3341_p13 = pneg %p3325_p11 }
  0x20   : > { %s2959_s19 = scalar_lea.hbm %s3920_s2, 512 }
  0x21   : > { %p2960_p12 = scmp.ne.s32.totalorder %s3920_s2, %s2959_s19  ;;  %p2966_p5 = scmp.lt.u32.totalorder %s2959_s19, %s3920_s2 }
  0x23   : > { %p2962_p0 = pnand %p3341_p13, %p2960_p12 }
  0x25   : > { %p2963_p3 = pneg %p2962_p0 }
  0x27   : > { %p2968_p7 = pnand %p2966_p5, %p2963_p3 }
  0x29   : > { %2971 = shalt.err (!%p2968_p7)
}
  0x2a   : > { %s2972_s10 = scalar_lea.vmem %s3318_s11, 512  ;;  %p2980_p2 = scmp.lt.s32.totalorder %s3318_s11, %s3318_s11 }
  0x2b   : > { %p2973_p9 = scmp.ne.s32.totalorder %s3318_s11, %s2972_s10  ;;  %p2981_p6 = scmp.lt.s32.totalorder %s2972_s10, %s2972_s10 }
  0x2d   : > { %p2975_p10 = pnand %p2973_p9, %p3341_p13  ;;  %p2982_p12 = por %p2981_p6, %p2980_p2 }
  0x2f   : > { %p2976_p1 = pneg %p2975_p10 }
  0x31   : > { %p2983_p0 = pnand %p2982_p12, %p2976_p1 }
  0x33   : > { %2986 = shalt.err (!%p2983_p0)
}
  0x34   : > { %s3909_s13 = smov 128   ;;  %s3219_s15 = smov 8  }
  0x35   : > { %2835 = dma.hbm_to_vmem [thread:$0]  (!%p3325_p11), %s3920_s2, 512, %s3318_s11, [#allocation6], %s3909_s13, %s3909_s13, %s3219_s15  }
  0x36   : > { %s3922_s3 = sld [smem:[#allocation23_spill]] }
  0x3c   : > { %s2987_s21 = scalar_lea.hbm %s3922_s3, 512 }
  0x3d   : > { %p2988_p1 = scmp.ne.s32.totalorder %s3922_s3, %s2987_s21  ;;  %p2994_p10 = scmp.lt.u32.totalorder %s2987_s21, %s3922_s3 }
  0x3f   : > { %p2990_p2 = pnand %p2988_p1, %p3341_p13 }
  0x41   : > { %p2991_p6 = pneg %p2990_p2 }
  0x43   : > { %p2996_p3 = pnand %p2994_p10, %p2991_p6 }
  0x45   : > { %2999 = shalt.err (!%p2996_p3)
}
  0x46   : > { %s3000_s11 = scalar_lea.vmem %s3329_s14, 512  ;;  %p3008_p12 = scmp.lt.s32.totalorder %s3329_s14, %s3329_s14 }
  0x47   : > { %p3001_p5 = scmp.ne.s32.totalorder %s3329_s14, %s3000_s11  ;;  %p3009_p0 = scmp.lt.s32.totalorder %s3000_s11, %s3000_s11 }
  0x49   : > { %p3003_p7 = pnand %p3001_p5, %p3341_p13  ;;  %p3010_p1 = por %p3009_p0, %p3008_p12 }
  0x4b   : > { %p3004_p9 = pneg %p3003_p7 }
  0x4d   : > { %p3011_p2 = pnand %p3010_p1, %p3004_p9 }
  0x4f   : > { %3014 = shalt.err (!%p3011_p2)
}
  0x50   : > { %2838 = dma.hbm_to_vmem [thread:$0]  (!%p3325_p11), %s3922_s3, 512, %s3329_s14, [#allocation9], %s3909_s13, %s3909_s13, %s3219_s15  }
  0x51   : > { %s3923_s4 = sld [smem:[#allocation24_spill]] }
  0x57   : > { %s3015_s20 = scalar_lea.hbm %s3923_s4, 512 }
  0x58   : > { %p3016_p6 = scmp.ne.s32.totalorder %s3923_s4, %s3015_s20  ;;  %p3022_p5 = scmp.lt.u32.totalorder %s3015_s20, %s3923_s4 }
  0x5a   : > { %p3018_p10 = pnand %p3016_p6, %p3341_p13 }
  0x5c   : > { %p3019_p3 = pneg %p3018_p10 }
  0x5e   : > { %p3024_p7 = pnand %p3022_p5, %p3019_p3 }
  0x60   : > { %3027 = shalt.err (!%p3024_p7)
}
  0x61   : > { %s3028_s11 = scalar_lea.vmem %s263_s16, 512  ;;  %p3036_p1 = scmp.lt.s32.totalorder %s263_s16, %s263_s16 }
  0x62   : > { %p3029_p9 = scmp.ne.s32.totalorder %s263_s16, %s3028_s11  ;;  %p3037_p2 = scmp.lt.s32.totalorder %s3028_s11, %s3028_s11 }
  0x64   : > { %p3031_p12 = pnand %p3029_p9, %p3341_p13  ;;  %p3038_p4 = por %p3037_p2, %p3036_p1 }
  0x66   : > { %p3032_p0 = pneg %p3031_p12 }
  0x68   : > { %p3039_p8 = pnand %p3038_p4, %p3032_p0 }
  0x6a   : > { %3042 = shalt.err (!%p3039_p8)
}
  0x6b   : > { %2841 = dma.hbm_to_vmem [thread:$0]  (!%p3325_p11), %s3923_s4, 512, %s263_s16, [#allocation9], %s3909_s13, %s3909_s13, %s3219_s15  }
  0x6c   : > { %s3414_s22 = sadd.s32 1, %s3213_s27   ;;  %s38_s17 = sadd.s32 1, %s3209_s26 }
  0x6d   : > { %s35_s12 = ssub.s32 %s3213_s27, %s3414_s22  ;;  %p45_p8 = scmp.ne.s32.totalorder %s3209_s26, %s3205_s25 }
  0x6e   : > { %p36_p4 = scmp.eq.s32.totalorder %s35_s12, 0  ;;  %p46_p13 = scmp.eq.s32.totalorder %s3213_s27, 0 }
  0x6f   : > { %p2859_p6 = scmp.lt.s32.totalorder %s3213_s27, 2  ;;  %p3924_p3 = scmp.eq.s32.totalorder %s3295_s28, 1 }
  0x70   : > { %s3424_s18 = scalar_select %p36_p4, %s3209_s26, %s38_s17  }
  0x71   : > { %p47_p10 = por %p46_p13, %p45_p8  ;;  %p3428_p5 = por %p3924_p3, %p45_p8 }
  0x72   : > { %s3433_s20 = sand.u32 1, %s3209_s26   ;;  %s2464_s16 = sshll.u32 %s3213_s27, 10 }
  0x73   : > { %s2385_s21 = sshll.u32 %s3433_s20, 6  ;;  %s3926_s0 = sld [smem:[#allocation21_spill]] }
  0x74   : > { %s283_s11 = scalar_lea.vmem [#allocation2], %s2385_s21  ;;  %p3442_p11 = pnand %p2859_p6, %p47_p10 }
  0x75   : > { %s290_s14 = sshll.u32 %s283_s11, 4  ;;  %s280_s17 = scalar_lea.sflag [#allocation3], %s3433_s20  ;;  %s3446_s14 = int_to_ptr.vmem [resolvable:$true] %s290_s14 }
  0x76   : > { %p3045_p9 = pneg %p3442_p11 }
  0x79   : > { %s3440_s10 = scalar_lea.hbm %s3926_s0, %s2464_s16  ;;  %s3048_s23 = scalar_lea.hbm %s3926_s0, 2048 }
  0x7a   : > { %s3043_s13 = scalar_lea.hbm %s3440_s10, 1024  ;;  %p3049_p1 = scmp.lt.u32.totalorder %s3440_s10, %s3926_s0 }
  0x7b   : > { %p3044_p7 = scmp.ne.s32.totalorder %s3440_s10, %s3043_s13  ;;  %p3050_p2 = scmp.lt.u32.totalorder %s3048_s23, %s3043_s13 }
  0x7c   : > { %p3052_p8 = scmp.lt.u32.totalorder %s3043_s13, %s3440_s10 }
  0x7d   : > { %p3046_p12 = pnand %p3045_p9, %p3044_p7  ;;  %p3051_p4 = por %p3050_p2, %p3049_p1 }
  0x7f   : > { %p3047_p0 = pneg %p3046_p12  ;;  %p3053_p13 = por %p3052_p8, %p3051_p4 }
  0x81   : > { %p3054_p6 = pnand %p3053_p13, %p3047_p0 }
  0x83   : > { %3057 = shalt.err (!%p3054_p6)
}
  0x84   : > { %s3058_s12 = scalar_lea.vmem %s3446_s14, 1024  ;;  %s3220_s16 = smov [#allocation2]  }
  0x85   : > { %p3059_p10 = scmp.ne.s32.totalorder %s3446_s14, %s3058_s12  ;;  %s3063_s21 = sshll.u32 %s3220_s16, 4  ;;  %s3064_s21 = int_to_ptr.vmem [resolvable:$false] %s3063_s21 }
  0x86   : > { %s3065_s29 = scalar_lea.vmem %s3064_s21, 2048  ;;  %p3066_p12 = scmp.lt.s32.totalorder %s3446_s14, %s3064_s21 }
  0x87   : > { %p3061_p3 = pnand %p3059_p10, %p3045_p9  ;;  %p3067_p1 = scmp.lt.s32.totalorder %s3065_s29, %s3058_s12 }
  0x89   : > { %p3062_p7 = pneg %p3061_p3  ;;  %p3068_p2 = por %p3067_p1, %p3066_p12 }
  0x8b   : > { %p3069_p4 = pnand %p3068_p2, %p3062_p7 }
  0x8d   : > { %3072 = shalt.err (!%p3069_p4)
}
  0x8e   : > { %s3928_s13 = smov 128   ;;  %s2388_s23 = sshll.u32 %s3433_s20, 7 }
  0x8f   : > { %2845 = dma.hbm_to_vmem [thread:$0]  (!%p3442_p11), %s3440_s10, 1024, %s3446_s14, %s280_s17, %s3928_s13, %s3928_s13, %s3219_s15  }
  0x90   : > { %s2466_s11 = sshll.u32 %s3213_s27, 11  ;;  %s304_s29 = scalar_lea.vmem [#allocation5], %s2388_s23 }
  0x91   : > { %s3485_s21 = scalar_lea.hbm %s3898_s1, %s2466_s11  ;;  %s312_s0 = sshll.u32 %s304_s29, 4  ;;  %s3487_s0 = int_to_ptr.vmem [resolvable:$true] %s312_s0 }
  0x92   : > { %s3929_s2 = sand.u32 1, %s3213_s27   ;;  %s3073_s4 = scalar_lea.hbm %s3485_s21, 2048 }
  0x93   : > { %s3491_s3 = scalar_lea.sflag [#allocation6], %s3929_s2  ;;  %p3074_p0 = scmp.ne.s32.totalorder %s3485_s21, %s3073_s4 }
  0x94   : > { %s3078_s14 = scalar_lea.hbm %s3898_s1, 4096  ;;  %p3079_p6 = scmp.lt.u32.totalorder %s3485_s21, %s3898_s1 }
  0x95   : > { %p3076_p8 = pnand %p3074_p0, %p3045_p9  ;;  %p3080_p10 = scmp.lt.u32.totalorder %s3078_s14, %s3073_s4 }
  0x96   : > { %p3082_p7 = scmp.lt.u32.totalorder %s3073_s4, %s3485_s21 }
  0x97   : > { %p3077_p13 = pneg %p3076_p8  ;;  %p3081_p3 = por %p3080_p10, %p3079_p6 }
  0x99   : > { %p3083_p12 = por %p3082_p7, %p3081_p3 }
  0x9b   : > { %p3084_p1 = pnand %p3083_p12, %p3077_p13 }
  0x9d   : > { %3087 = shalt.err (!%p3084_p1)
}
  0x9e   : > { %s3088_s2 = scalar_lea.vmem %s3487_s0, 2048  ;;  %s3221_s23 = smov [#allocation5]  }
  0x9f   : > { %p3089_p2 = scmp.ne.s32.totalorder %s3487_s0, %s3088_s2  ;;  %s3093_s12 = sshll.u32 %s3221_s23, 4  ;;  %s3094_s12 = int_to_ptr.vmem [resolvable:$false] %s3093_s12 }
  0xa0   : > { %s3095_s16 = scalar_lea.vmem %s3094_s12, 4096  ;;  %p3096_p8 = scmp.lt.s32.totalorder %s3487_s0, %s3094_s12 }
  0xa1   : > { %p3091_p4 = pnand %p3089_p2, %p3045_p9  ;;  %p3097_p6 = scmp.lt.s32.totalorder %s3095_s16, %s3088_s2 }
  0xa3   : > { %p3092_p0 = pneg %p3091_p4  ;;  %p3098_p10 = por %p3097_p6, %p3096_p8 }
  0xa5   : > { %p3099_p3 = pnand %p3098_p10, %p3092_p0 }
  0xa7   : > { %3102 = shalt.err (!%p3099_p3)
}
  0xa8   : > { %2848 = dma.hbm_to_vmem [thread:$0]  (!%p3442_p11), %s3485_s21, 2048, %s3487_s0, %s3491_s3, %s3928_s13, %s3928_s13, %s3219_s15  }
  0xa9   : > { %p3930_p9 = scmp.ne.s32.totalorder %s3918_s9, 0 }
  0xaa   : > { %s3523_s4 = sand.u32 (!%p3930_p9), 1, %s3205_s25   ;;  %p3931_p13 = scmp.ne.s32.totalorder (!%p3930_p9), %s3915_s30, 0 }
  0xab   : > { %324 = sbr.rel (%p3930_p9) target bundleno = 1562 (0x61a), region = 44  ;;  %s2393_s29 = sshll.u32 (!%p3930_p9), %s3523_s4, 6 }
  0xac   : > { %s327_s20 = scalar_lea.sflag (!%p3930_p9), [#allocation3], %s3523_s4  ;;  %s3527_s10 = scalar_lea.vmem (!%p3930_p9), [#allocation2], %s2393_s29 }
  0xb2   : > { %3176 = dma.done.wait (%p3931_p13), %s327_s20, 1024  }
  0xb3   : > { %3178 = vsyncadd (%p3931_p13), %s327_s20, 4294966272  ;;  %s335_s0 = sand.u32 1, %s3295_s28   ;;  %s2394_s3 = sshll.u32 %s3523_s4, 7 }
  0xb4   : > { %s336_s9 = scalar_lea.sflag [#allocation6], %s335_s0  ;;  %s3535_s15 = scalar_lea.vmem [#allocation5], %s2394_s3 }
  0xb5   : > { %3180 = dma.done.wait (%p3931_p13), %s336_s9, 2048  }
  0xb6   : > { %3182 = vsyncadd (%p3931_p13), %s336_s9, 4294965248  ;;  %p3932_p11 = scmp.eq.s32.totalorder %s3295_s28, 0 }
  0xb8   : > { %3184 = dma.done.wait (%p3932_p11), [#allocation6], 512   ;;  %p3933_p7 = pmov %p3932_p11 }
  0xba   : > { %3186 = vsyncadd (%p3933_p7), [#allocation6], 4294966784  ;;  %p3934_p12 = pmov %p3933_p7 }
  0xbb   : > { %p3935_p1 = pmov %p3933_p7 }
  0xbc   : > { %3188 = dma.done.wait (%p3934_p12), [#allocation9], 1024  }
  0xbd   : > { %3190 = vsyncadd (%p3935_p1), [#allocation9], 4294966272  ;;  %v3222_v0 = vmov 0.0|0.0   ;;  %vm422_vm0 = vcmask 261120   ;;  %v418_v1 = vld [vmem:[#allocation7] sm:$0xff]  ;;  %v419_v2 = vld [vmem:[#allocation7 + $0x8] sm:$0xff] }
  0xbe   : > { %2740 = vmatprep.subr.bf16.mxu0 %v3222_v0  ;;  %v420_v3 = vld [vmem:[#allocation7 + $0x10] sm:$0xff]  ;;  %v2724_v4 = vpack.c.bf16 %v419_v2, %v418_v1  ;;  %v421_v5 = vld [vmem:[#allocation7 + $0x18] sm:$0xff]  ;;  %v3551_v6 = vld [vmem:[%s3527_s10] sm:$0xff]  ;;  %vm3223_vm2 = vmmov 0   ;;  %v3224_v22 = vmov 0.0   ;;  %vm1184_vm3 = vcmask 130048  }
  0xbf   : > { %v2728_v7 = vpack.c.bf16 %v421_v5, %v420_v3  ;;  %2560 = vmatprep.mubr.msk.f32.mxu1 %vm422_vm0, %v3551_v6  ;;  %v406_v8 = vld [vmem:[%s3535_s15 + $0x20] sm:$0xff]  ;;  %v407_v9 = vld [vmem:[%s3535_s15 + $0x28] sm:$0xff]  ;;  %vm3561_vm1 = vmpackc.low %vm422_vm0, %vm422_vm0  ;;  %2590 = vmatprep.mubr.msk.f32.mxu0 %vm3223_vm2, %v3224_v22  ;;  %s2399_s30 = sshll.u32 %s3523_s4, 3  ;;  %s3225_s13 = smov 32   ;;  %vm2127_vm4 = vcmask 261248   ;;  %vm2138_vm5 = vcmask 392448  }
  0xc0   : > { %2725 = vmatprep.subr.bf16.mxu1 %v2724_v4  ;;  %v3557_v10 = vpack.c.bf16 %v407_v9, %v406_v8  ;;  %v3566_v12 = vld [vmem:[%s3527_s10 + $0x8] sm:$0xff]  ;;  %v3572_v13 = vld [vmem:[%s3527_s10 + $0x10] sm:$0xff]  ;;  %v402_v14 = vld [vmem:[%s3535_s15] sm:$0xff]  ;;  %s3715_s8 = scalar_lea.vmem [#allocation12], %s2399_s30  ;;  %s3226_s21 = smov 16   ;;  %vm2149_vm6 = vcmask 523648  }
  0xc1   : > { %2727 = vmatpush3.bf16.msra.mxu1 %v2724_v4  ;;  %v403_v15 = vld [vmem:[%s3535_s15 + $0x8] sm:$0xff]  ;;  %v3583_v16 = vld [vmem:[%s3527_s10 + $0x18] sm:$0xff]  ;;  %v3586_v17 = vld [vmem:[%s3527_s10 + $0x20] sm:$0xff]  ;;  %s3227_s14 = smov 64   ;;  %s3228_s17 = smov 48   ;;  %vm2160_vm7 = vcmask 654848  }
  0xc2   : > { %2729 = vmatprep.subr.bf16.mxu1 %v2728_v7  ;;  %2743 = vmatpush3.bf16.xpose.msk.msra.mxu0 %vm3561_vm1, %v3557_v10  ;;  %v2733_v18 = vpack.c.bf16 %v403_v15, %v402_v14  ;;  %v3593_v19 = vld [vmem:[%s3527_s10 + $0x28] sm:$0xff]  ;;  %v3596_v20 = vld [vmem:[%s3527_s10 + $0x30] sm:$0xff]  ;;  %v3606_v21 = vld [vmem:[%s3527_s10 + $0x38] sm:$0xff]  ;;  %s3229_s11 = smov 96   ;;  %s3230_s2 = smov 80   ;;  %vm2166_vm8 = vcmask 786048  }
  0xc3   : > { %2748 = vmatprep.subr.bf16.mxu0 %v3222_v0  ;;  %v404_v23 = vld [vmem:[%s3535_s15 + $0x10] sm:$0xff]  ;;  %v405_v24 = vld [vmem:[%s3535_s15 + $0x18] sm:$0xff]  ;;  %v410_v27 = vld [vmem:[%s3535_s15 + $0x40] sm:$0xff]  ;;  %vm2176_vm9 = vcmask 917248   ;;  %s2398_s16 = sshll.u32 %s3523_s4, 4  ;;  %s3231_s20 = smov 112  }
  0xc4   : > { %v2737_v25 = vpack.c.bf16 %v405_v24, %v404_v23  ;;  %v411_v28 = vld [vmem:[%s3535_s15 + $0x48] sm:$0xff]  ;;  %v408_v32 = vld [vmem:[%s3535_s15 + $0x30] sm:$0xff]  ;;  %v409_v33 = vld [vmem:[%s3535_s15 + $0x38] sm:$0xff]  ;;  %s3793_s29 = scalar_lea.vmem [#allocation11], %s2398_s16  ;;  %vm2133_vm10 = vcmask 523520   ;;  %vm2144_vm11 = vcmask 785920  }
  0xc5   : > { %2731 = vmatpush3.bf16.msra.mxu1 %v2728_v7  ;;  %v3621_v30 = vpack.c.bf16 %v411_v28, %v410_v27  ;;  %v3632_v35 = vpack.c.bf16 %v409_v33, %v408_v32  ;;  %v414_v37 = vld [vmem:[%s3535_s15 + $0x60] sm:$0xff]  ;;  %v415_v38 = vld [vmem:[%s3535_s15 + $0x68] sm:$0xff]  ;;  %v412_v41 = vld [vmem:[%s3535_s15 + $0x50] sm:$0xff]  ;;  %vm2155_vm12 = vcmask 1048320   ;;  %s2467_s10 = sshll.u32 %s3295_s28, 8  ;;  %s2213_s0 = sshll.u32 %s3793_s29, 4  ;;  %s3820_s0 = int_to_ptr.vmem [resolvable:$true] %s2213_s0 }
  0xc6   : > { %2732 = vmatprep.subr.bf16.mxu1 %v3222_v0  ;;  %v3643_v40 = vpack.c.bf16 %v415_v38, %v414_v37  ;;  %v413_v42 = vld [vmem:[%s3535_s15 + $0x58] sm:$0xff]  ;;  %v416_v46 = vld [vmem:[%s3535_s15 + $0x70] sm:$0xff]  ;;  %s2461_s3 = sshll.u32 %s3295_s28, 7  ;;  %s2226_s9 = sshll.u32 %s3715_s8, 4  ;;  %vm2186_vm13 = vcmask 1048448   ;;  %s3831_s9 = int_to_ptr.vmem [resolvable:$true] %s2226_s9 }
  0xc7   : > { %v3654_v45 = vpack.c.bf16 %v413_v42, %v412_v41  ;;  %v417_v47 = vld [vmem:[%s3535_s15 + $0x78] sm:$0xff] }
  0xc8   : > { %2561 = vmatmul.mubr.msk.f32.vlgmr.msra.gmra.mrb[0].mxu1 %vm422_vm0, %v3566_v12  ;;  %v3669_v48 = vpack.c.bf16 %v417_v47, %v416_v46 }
  0xc9   : > { %2563 = vmatprep.mubr.msk.f32.mxu1 %vm422_vm0, %v3572_v13 }
  0xcc   : > { %2564 = vmatmul.mubr.msk.f32.gmra.mrb[2].mxu1 %vm422_vm0, %v3583_v16 }
  0xcd   : > { %2566 = vmatprep.mubr.msk.f32.mxu1 %vm422_vm0, %v3586_v17 }
  0xce   : > { %2735 = vmatpush3.bf16.xpose.msk.msra.mxu1 %vm3561_vm1, %v2733_v18 }
  0xcf   : > { %2736 = vmatprep.subr.bf16.mxu1 %v3222_v0 }
  0xd0   : > { %2567 = vmatmul.mubr.msk.f32.gmra.mrb[4].mxu1 %vm422_vm0, %v3593_v19 }
  0xd1   : > { %2569 = vmatprep.mubr.msk.f32.mxu1 %vm422_vm0, %v3596_v20 }
  0xd4   : > { %2570 = vmatmul.mubr.msk.f32.gmra.mrb[6].mxu1 %vm422_vm0, %v3606_v21 }
  0xd5   : > { %2576 = vmatprep.mubr.msk.f32.mxu1 %vm3223_vm2, %v3224_v22 }
 0x19b   : > { %v2562_v26 = vpop.f32.mrb[0].mxu1 }
 0x19c   : > { %v513_v29 = vpop.f32.mrb[1].mxu1 }
 0x19d   : > { %2577 = vmatmul.mubr.msk.f32.vlgmr.msra.gmra.mrb[8].mxu1 %vm422_vm0, %v513_v29 }
 0x19e   : > { %2739 = vmatpush3.bf16.xpose.msk.msra.mxu1 %vm3561_vm1, %v2737_v25  ;;  %2583 = vmatprep.mubr.msk.f32.mxu1 %vm3223_vm2, %v3224_v22 }
 0x19f   : > { %v2565_v31 = vpop.f32.mrb[2].mxu1  ;;  %2744 = vmatprep.subr.bf16.mxu1 %v3222_v0 }
 0x1a0   : > { %v523_v34 = vpop.f32.mrb[3].mxu1 }
 0x1a1   : > { %2591 = vmatmul.mubr.msk.f32.vlgmr.msra.gmra.mrb[0].mxu0 %vm422_vm0, %v523_v34 }
 0x1a2   : > { %2751 = vmatpush3.bf16.xpose.msk.msra.mxu0 %vm3561_vm1, %v3621_v30  ;;  %2604 = vmatprep.mubr.msk.f32.mxu0 %vm3223_vm2, %v3224_v22 }
 0x1a3   : > { %v2568_v36 = vpop.f32.mrb[4].mxu1  ;;  %2756 = vmatprep.subr.bf16.mxu0 %v3222_v0 }
 0x1a4   : > { %v533_v39 = vpop.f32.mrb[5].mxu1 }
 0x1a5   : > { %2584 = vmatmul.mubr.msk.f32.vlgmr.msra.gmra.mrb[10].mxu1 %vm422_vm0, %v2562_v26 }
 0x1a6   : > { %2747 = vmatpush3.bf16.xpose.msk.msra.mxu1 %vm3561_vm1, %v3632_v35  ;;  %2597 = vmatprep.mubr.msk.f32.mxu1 %vm3223_vm2, %v3224_v22 }
 0x1a7   : > { %2752 = vmatprep.subr.bf16.mxu1 %v3222_v0  ;;  %v2571_v43 = vpop.f32.mrb[6].mxu1 }
 0x1a8   : > { %v543_v44 = vpop.f32.mrb[7].mxu1 }
 0x1a9   : > { %2605 = vmatmul.mubr.msk.f32.vlgmr.msra.gmra.mrb[2].mxu0 %vm422_vm0, %v533_v39 }
 0x1aa   : > { %2759 = vmatpush3.bf16.xpose.msk.msra.mxu0 %vm3561_vm1, %v3643_v40  ;;  %2618 = vmatprep.mubr.msk.f32.mxu0 %vm3223_vm2, %v3224_v22 }
 0x1ab   : > { %2764 = vmatprep.subr.bf16.mxu0 %v3222_v0 }
 0x1ad   : > { %2598 = vmatmul.mubr.msk.f32.vlgmr.msra.gmra.mrb[12].mxu1 %vm422_vm0, %v2565_v31 }
 0x1ae   : > { %2755 = vmatpush3.bf16.xpose.msk.msra.mxu1 %vm3561_vm1, %v3654_v45  ;;  %2611 = vmatprep.mubr.msk.f32.mxu1 %vm3223_vm2, %v3224_v22 }
 0x1af   : > { %2760 = vmatprep.subr.bf16.mxu1 %v3222_v0 }
 0x1b1   : > { %2619 = vmatmul.mubr.msk.f32.vlgmr.msra.gmra.mrb[4].mxu0 %vm422_vm0, %v543_v44 }
 0x1b2   : > { %2766 = vmatpush3.bf16.msra.mxu0 %v2733_v18  ;;  %2632 = vmatprep.mubr.msk.f32.mxu0 %vm3223_vm2, %v3224_v22 }
 0x1b3   : > { %2770 = vmatprep.subr.bf16.mxu0 %v3222_v0 }
 0x1b5   : > { %2612 = vmatmul.mubr.msk.f32.vlgmr.msra.gmra.mrb[14].mxu1 %vm422_vm0, %v2568_v36 }
 0x1b6   : > { %2763 = vmatpush3.bf16.xpose.msk.msra.mxu1 %vm3561_vm1, %v3669_v48  ;;  %2625 = vmatprep.mubr.msk.f32.mxu1 %vm3223_vm2, %v3224_v22 }
 0x1b7   : > { %2767 = vmatprep.subr.bf16.mxu1 %v3222_v0 }
 0x1bd   : > { %2626 = vmatmul.mubr.msk.f32.vlgmr.msra.gmra.mrb[16].mxu1 %vm422_vm0, %v2571_v43 }
 0x1be   : > { %2769 = vmatpush3.bf16.msra.mxu1 %v2737_v25  ;;  %2639 = vmatprep.mubr.msk.f32.mxu1 %vm3223_vm2, %v3224_v22 }
 0x1bf   : > { %2773 = vmatprep.subr.bf16.mxu1 %v3222_v0 }
 0x270   : > { %v627_v49 = vpop.f32.mrb[8].mxu1 }
 0x271   : > { %v2578_v50 = vpop.f32.mrb[9].mxu1  ;;  %v1185_v51 = vsel %vm1184_vm3, %v627_v49, -inf }
 0x272   : > { %1186 = vmax.xlane.f32.xlu0 %v1185_v51 }
 0x274   : > { %v785_v52 = vpop.f32.mrb[0].mxu0 }
 0x275   : > { %v1191_v53 = vsel %vm1184_vm3, %v785_v52, -inf  ;;  %v2592_v54 = vpop.f32.mrb[1].mxu0 }
 0x276   : > { %1192 = vmax.xlane.f32.xlu1 %v1191_v53 }
 0x278   : > { %v706_v55 = vpop.f32.mrb[10].mxu1 }
 0x279   : > { %v2585_v56 = vpop.f32.mrb[11].mxu1  ;;  %v1188_v57 = vsel %vm1184_vm3, %v706_v55, -inf }
 0x27a   : > { %1189 = vmax.xlane.f32.xlu0 %v1188_v57 }
 0x27c   : > { %v943_v58 = vpop.f32.mrb[2].mxu0 }
 0x27d   : > { %v1197_v59 = vsel %vm1184_vm3, %v943_v58, -inf  ;;  %v2606_v60 = vpop.f32.mrb[3].mxu0 }
 0x27e   : > { %1198 = vmax.xlane.f32.xlu0 %v1197_v59 }
 0x280   : > { %v864_v61 = vpop.f32.mrb[12].mxu1 }
 0x281   : > { %v2599_v62 = vpop.f32.mrb[13].mxu1  ;;  %v1194_v63 = vsel %vm1184_vm3, %v864_v61, -inf }
 0x282   : > { %1195 = vmax.xlane.f32.xlu1 %v1194_v63 }
 0x284   : > { %v1101_v1 = vpop.f32.mrb[4].mxu0 }
 0x285   : > { %v1203_v2 = vsel %vm1184_vm3, %v1101_v1, -inf  ;;  %v2620_v3 = vpop.f32.mrb[5].mxu0 }
 0x286   : > { %1204 = vmax.xlane.f32.xlu0 %v1203_v2 }
 0x288   : > { %v1022_v4 = vpop.f32.mrb[14].mxu1 }
 0x289   : > { %v2613_v5 = vpop.f32.mrb[15].mxu1  ;;  %v1200_v7 = vsel %vm1184_vm3, %v1022_v4, -inf }
 0x28a   : > { %1201 = vmax.xlane.f32.xlu1 %v1200_v7 }
 0x290   : > { %v1180_v8 = vpop.f32.mrb[16].mxu1 }
 0x291   : > { %v2627_v9 = vpop.f32.mrb[17].mxu1  ;;  %v1206_v11 = vsel %vm1184_vm3, %v1180_v8, -inf }
 0x292   : > { %1207 = vmax.xlane.f32.xlu1 %v1206_v11 }
 0x2ff   : > { %v1187_v14 = vpop.xlane.xlu0 %1186 }
 0x300   : > { %v1209_v15 = vsub.f32 %v627_v49, %v1187_v14 }
 0x302   : > { %v1217_v18 = vmul.f32 1.442695, %v1209_v15 }
 0x303   : > { %v1193_v23 = vpop.xlane.xlu1 %1192 }
 0x304   : > { %2911 = vpow2.f32 %v1217_v18  ;;  %v1211_v24 = vsub.f32 %v785_v52, %v1193_v23 }
 0x306   : > { %v1221_v25 = vmul.f32 1.442695, %v1211_v24 }
 0x307   : > { %v1190_v26 = vpop.xlane.xlu0 %1189 }
 0x308   : > { %2913 = vpow2.f32 %v1221_v25  ;;  %v1210_v27 = vsub.f32 %v706_v55, %v1190_v26  ;;  %v1861_v25 = vld [vmem:[#allocation10] sm:$0xff]  ;;  %v1862_v26 = vld [vmem:[#allocation10 + $0x8] sm:$0xff] }
 0x30a   : > { %v1219_v28 = vmul.f32 1.442695, %v1210_v27  ;;  %v2788_v27 = vpack.c.bf16 %v1862_v26, %v1861_v25 }
 0x30b   : > { %v1199_v29 = vpop.xlane.xlu0 %1198 }
 0x30c   : > { %2915 = vpow2.f32 %v1219_v28  ;;  %v1213_v31 = vsub.f32 %v943_v58, %v1199_v29  ;;  %v1863_v29 = vld [vmem:[#allocation10 + $0x10] sm:$0xff] }
 0x30e   : > { %v2912_v32 = vpop.eup %2911  ;;  %v1225_v33 = vmul.f32 1.442695, %v1213_v31  ;;  %v1864_v31 = vld [vmem:[#allocation10 + $0x18] sm:$0xff] }
 0x30f   : > { %v1196_v34 = vpop.xlane.xlu1 %1195  ;;  %v1233_v36 = vsel %vm1184_vm3, %v2912_v32, 0.0 }
 0x310   : > { %2917 = vpow2.f32 %v1225_v33  ;;  %v1212_v37 = vsub.f32 %v864_v61, %v1196_v34  ;;  %1234 = vadd.xlane.f32.xlu0 %v1233_v36  ;;  %v2792_v34 = vpack.c.bf16 %v1864_v31, %v1863_v29 }
 0x312   : > { %v2914_v38 = vpop.eup %2913  ;;  %v1223_v39 = vmul.f32 1.442695, %v1212_v37 }
 0x313   : > { %v1205_v41 = vpop.xlane.xlu0 %1204  ;;  %v1239_v42 = vsel %vm1184_vm3, %v2914_v38, 0.0 }
 0x314   : > { %2919 = vpow2.f32 %v1223_v39  ;;  %v1215_v43 = vsub.f32 %v1101_v1, %v1205_v41  ;;  %1240 = vadd.xlane.f32.xlu0 %v1239_v42 }
 0x316   : > { %v2916_v44 = vpop.eup %2915  ;;  %v1229_v46 = vmul.f32 1.442695, %v1215_v43 }
 0x317   : > { %v1202_v47 = vpop.xlane.xlu1 %1201  ;;  %v1236_v49 = vsel %vm1184_vm3, %v2916_v44, 0.0 }
 0x318   : > { %2921 = vpow2.f32 %v1229_v46  ;;  %v1214_v50 = vsub.f32 %v1022_v4, %v1202_v47  ;;  %1237 = vadd.xlane.f32.xlu1 %v1236_v49 }
 0x31a   : > { %v2918_v51 = vpop.eup %2917  ;;  %v1227_v52 = vmul.f32 1.442695, %v1214_v50 }
 0x31b   : > { %v1245_v53 = vsel %vm1184_vm3, %v2918_v51, 0.0 }
 0x31c   : > { %2923 = vpow2.f32 %v1227_v52  ;;  %1246 = vadd.xlane.f32.xlu0 %v1245_v53 }
 0x31e   : > { %v3697_v54 = vpop.eup %2919 }
 0x31f   : > { %v1208_v55 = vpop.xlane.xlu1 %1207  ;;  %v1242_v56 = vsel %vm1184_vm3, %v3697_v54, 0.0 }
 0x320   : > { %v1216_v57 = vsub.f32 %v1180_v8, %v1208_v55  ;;  %1243 = vadd.xlane.f32.xlu1 %v1242_v56 }
 0x322   : > { %v3701_v58 = vpop.eup %2921  ;;  %v1231_v59 = vmul.f32 1.442695, %v1216_v57 }
 0x323   : > { %v1251_v60 = vsel %vm1184_vm3, %v3701_v58, 0.0 }
 0x324   : > { %2925 = vpow2.f32 %v1231_v59  ;;  %1252 = vadd.xlane.f32.xlu0 %v1251_v60  ;;  %v2456_v59 = vld [vmem:[%s3902_s5] ss:$0 sm:$0xff] }
 0x326   : > { %v3705_v61 = vpop.eup %2923 }
 0x327   : > { %v1248_v62 = vsel %vm1184_vm3, %v3705_v61, 0.0 }
 0x328   : > { %1249 = vadd.xlane.f32.xlu1 %v1248_v62 }
 0x32e   : > { %v3709_v63 = vpop.eup %2925 }
 0x32f   : > { %v1254_v1 = vsel %vm1184_vm3, %v3709_v63, 0.0 }
 0x330   : > { %1255 = vadd.xlane.f32.xlu1 %v1254_v1 }
 0x39d   : > { %v1235_v2 = vpop.xlane.xlu0 %1234 }
 0x39e   : > { %2927 = vrcp.f32 %v1235_v2 }
 0x3a1   : > { %v1241_v3 = vpop.xlane.xlu0 %1240 }
 0x3a2   : > { %2929 = vrcp.f32 %v1241_v3 }
 0x3a5   : > { %v1238_v4 = vpop.xlane.xlu1 %1237 }
 0x3a6   : > { %2931 = vrcp.f32 %v1238_v4 }
 0x3a8   : > { %v2928_v5 = vpop.eup %2927 }
 0x3a9   : > { %v1265_v7 = vmul.f32 %v2928_v5, %v2912_v32  ;;  %v1247_v8 = vpop.xlane.xlu0 %1246 }
 0x3aa   : > { %2933 = vrcp.f32 %v1247_v8 }
 0x3ab   : > { %2633 = vmatmul.mubr.msk.f32.vlgmr.msra.gmra.mrb[6].mxu0 %vm1184_vm3, %v1265_v7  ;;  %2122 = vst.msk [vmem:[%s3715_s8] sm:$0xff] %vm1184_vm3, %v1265_v7 }
 0x3ac   : > { %v2930_v9 = vpop.eup %2929  ;;  %2772 = vmatpush3.bf16.msra.mxu0 %v3557_v10  ;;  %2646 = vmatprep.mubr.msk.f32.mxu0 %vm3223_vm2, %v3224_v22 }
 0x3ad   : > { %v1267_v11 = vmul.f32 %v2930_v9, %v2914_v38  ;;  %v1244_v14 = vpop.xlane.xlu1 %1243  ;;  %2776 = vmatprep.subr.bf16.mxu0 %v3222_v0 }
 0x3ae   : > { %2935 = vrcp.f32 %v1244_v14 }
 0x3af   : > { %2647 = vmatmul.mubr.msk.f32.vlgmr.msra.gmra.mrb[8].mxu0 %vm1184_vm3, %v1267_v11  ;;  %2135 = vrot.lane.b32.xlu1 %v1267_v11, %s3225_s13 }
 0x3b0   : > { %v2932_v15 = vpop.eup %2931  ;;  %2778 = vmatpush3.bf16.msra.mxu0 %v3621_v30  ;;  %2660 = vmatprep.mubr.msk.f32.mxu0 %vm3223_vm2, %v3224_v22 }
 0x3b1   : > { %v1253_v10 = vpop.xlane.xlu0 %1252  ;;  %v1266_v18 = vmul.f32 %v2932_v15, %v2916_v44  ;;  %2782 = vmatprep.subr.bf16.mxu0 %v3222_v0 }
 0x3b2   : > { %2937 = vrcp.f32 %v1253_v10 }
 0x3b3   : > { %2124 = vrot.lane.b32.xlu0 %v1266_v18, %s3226_s21  ;;  %2640 = vmatmul.mubr.msk.f32.vlgmr.msra.gmra.mrb[18].mxu1 %vm1184_vm3, %v1266_v18 }
 0x3b4   : > { %v2934_v23 = vpop.eup %2933  ;;  %2775 = vmatpush3.bf16.msra.mxu1 %v3632_v35  ;;  %2653 = vmatprep.mubr.msk.f32.mxu1 %vm3223_vm2, %v3224_v22 }
 0x3b5   : > { %v1269_v24 = vmul.f32 %v2934_v23, %v2918_v51  ;;  %v1250_v30 = vpop.xlane.xlu1 %1249  ;;  %2779 = vmatprep.subr.bf16.mxu1 %v3222_v0 }
 0x3b6   : > { %2939 = vrcp.f32 %v1250_v30 }
 0x3b7   : > { %2661 = vmatmul.mubr.msk.f32.vlgmr.msra.gmra.mrb[10].mxu0 %vm1184_vm3, %v1269_v24  ;;  %2157 = vrot.lane.b32.xlu1 %v1269_v24, %s3227_s14 }
 0x3b8   : > { %v2936_v28 = vpop.eup %2935  ;;  %2784 = vmatpush3.bf16.msra.mxu0 %v3643_v40  ;;  %2674 = vmatprep.mubr.msk.f32.mxu0 %vm3223_vm2, %v3224_v22 }
 0x3b9   : > { %v1268_v35 = vmul.f32 %v2936_v28, %v3697_v54  ;;  %2789 = vmatprep.subr.bf16.mxu0 %v2788_v27 }
 0x3bb   : > { %2146 = vrot.lane.b32.xlu1 %v1268_v35, %s3228_s17  ;;  %2654 = vmatmul.mubr.msk.f32.vlgmr.msra.gmra.mrb[20].mxu1 %vm1184_vm3, %v1268_v35  ;;  %s2194_s17 = scalar_lea.sflag [#allocation4], %s3523_s4 }
 0x3bc   : > { %v2938_v32 = vpop.eup %2937  ;;  %2781 = vmatpush3.bf16.msra.mxu1 %v3654_v45  ;;  %2667 = vmatprep.mubr.msk.f32.mxu1 %vm3223_vm2, %v3224_v22 }
 0x3bd   : > { %v1271_v40 = vmul.f32 %v2938_v32, %v3701_v58  ;;  %v1256_v33 = vpop.xlane.xlu1 %1255  ;;  %2785 = vmatprep.subr.bf16.mxu1 %v3222_v0 }
 0x3be   : > { %2941 = vrcp.f32 %v1256_v33 }
 0x3bf   : > { %2675 = vmatmul.mubr.msk.f32.vlgmr.msra.gmra.mrb[12].mxu0 %vm1184_vm3, %v1271_v40  ;;  %2173 = vrot.lane.b32.xlu0 %v1271_v40, %s3229_s11 }
 0x3c0   : > { %v2940_v36 = vpop.eup %2939  ;;  %2791 = vmatpush3.bf16.msra.mxu0 %v2788_v27  ;;  %2692 = vmatprep.mubr.msk.f32.mxu0 %vm422_vm0, %v3551_v6  ;;  %v1857_v6 = vld [vmem:[#allocation8] sm:$0xff] }
 0x3c1   : > { %v1270_v45 = vmul.f32 %v2940_v36, %v3705_v61  ;;  %2793 = vmatprep.subr.bf16.mxu0 %v2792_v34 }
 0x3c3   : > { %2163 = vrot.lane.b32.xlu1 %v1270_v45, %s3230_s2  ;;  %2668 = vmatmul.mubr.msk.f32.vlgmr.msra.gmra.mrb[22].mxu1 %vm1184_vm3, %v1270_v45  ;;  %s3232_s2 = smov [#allocation11]  }
 0x3c4   : > { %2787 = vmatpush3.bf16.msra.mxu1 %v3669_v48  ;;  %2681 = vmatprep.mubr.msk.f32.mxu1 %vm3223_vm2, %v3224_v22  ;;  %s3107_s23 = sshll.u32 %s3232_s2, 4  ;;  %s3108_s23 = int_to_ptr.vmem [resolvable:$false] %s3107_s23 }
 0x3c5   : > { %2795 = vmatpush3.bf16.msra.mxu0 %v2792_v34  ;;  %s3109_s12 = scalar_lea.vmem %s3108_s23, 512  ;;  %p3110_p8 = scmp.lt.s32.totalorder %s3820_s0, %s3108_s23 }
 0x3c8   : > { %v2942_v0 = vpop.eup %2941  ;;  %2693 = vmatmul.mubr.msk.f32.vlgmr.msra.gmra.mrb[14].mxu0 %vm422_vm0, %v3566_v12  ;;  %v1858_v12 = vld [vmem:[#allocation8 + $0x8] sm:$0xff] }
 0x3c9   : > { %v3758_v37 = vmul.f32 %v2942_v0, %v3709_v63  ;;  %2695 = vmatprep.mubr.msk.f32.mxu0 %vm422_vm0, %v3572_v13  ;;  %v2796_v13 = vpack.c.bf16 %v1858_v12, %v1857_v6 }
 0x3cb   : > { %2682 = vmatmul.mubr.msk.f32.vlgmr.msra.gmra.mrb[24].mxu1 %vm1184_vm3, %v3758_v37  ;;  %2797 = vmatprep.subr.bf16.mxu0 %v2796_v13 }
 0x3cc   : > { %2696 = vmatmul.mubr.msk.f32.gmra.mrb[16].mxu0 %vm422_vm0, %v3583_v16  ;;  %v1859_v16 = vld [vmem:[#allocation8 + $0x10] sm:$0xff] }
 0x3cd   : > { %2698 = vmatprep.mubr.msk.f32.mxu0 %vm422_vm0, %v3586_v17  ;;  %2799 = vmatpush3.bf16.msra.mxu0 %v2796_v13  ;;  %v1860_v17 = vld [vmem:[#allocation8 + $0x18] sm:$0xff] }
 0x3ce   : > { %v2800_v22 = vpack.c.bf16 %v1860_v17, %v1859_v16 }
 0x3d0   : > { %2699 = vmatmul.mubr.msk.f32.gmra.mrb[18].mxu0 %vm422_vm0, %v3593_v19  ;;  %2801 = vmatprep.subr.bf16.mxu0 %v2800_v22 }
 0x3d1   : > { %2701 = vmatprep.mubr.msk.f32.mxu0 %vm422_vm0, %v3596_v20  ;;  %2803 = vmatpush3.bf16.msra.mxu0 %v2800_v22 }
 0x3d4   : > { %2702 = vmatmul.mubr.msk.f32.gmra.mrb[20].mxu0 %vm422_vm0, %v3606_v21 }
 0x421   : > { %v2136_v19 = vpop.permute.xlu1 %2135 }
 0x425   : > { %v2125_v20 = vpop.permute.xlu0 %2124 }
 0x426   : > { %2128 = vst.msk [vmem:[%s3715_s8] sm:$0xff] %vm2127_vm4, %v2125_v20 }
 0x427   : > { %2139 = vst.msk [vmem:[%s3715_s8] sm:$0xff] %vm2138_vm5, %v2136_v19 }
 0x429   : > { %v2158_v21 = vpop.permute.xlu1 %2157 }
 0x42d   : > { %v2147_v48 = vpop.permute.xlu1 %2146 }
 0x42e   : > { %2150 = vst.msk [vmem:[%s3715_s8] sm:$0xff] %vm2149_vm6, %v2147_v48 }
 0x42f   : > { %2161 = vst.msk [vmem:[%s3715_s8] sm:$0xff] %vm2160_vm7, %v2158_v21 }
 0x431   : > { %v2174_v39 = vpop.permute.xlu0 %2173 }
 0x435   : > { %v2164_v38 = vpop.permute.xlu1 %2163 }
 0x436   : > { %2167 = vst.msk [vmem:[%s3715_s8] sm:$0xff] %vm2166_vm8, %v2164_v38 }
 0x437   : > { %2177 = vst.msk [vmem:[%s3715_s8] sm:$0xff] %vm2176_vm9, %v2174_v39 }
 0x47e   : > { %v1342_v41 = vpop.f32.mrb[6].mxu0 }
 0x47f   : > { %v2634_v42 = vpop.f32.mrb[7].mxu0  ;;  %2712 = vmatprep.mubr.msk.f32.mxu0 %vm422_vm0, %v1342_v41 }
 0x482   : > { %v1488_v43 = vpop.f32.mrb[8].mxu0 }
 0x483   : > { %v2648_v44 = vpop.f32.mrb[9].mxu0 }
 0x486   : > { %v1415_v46 = vpop.f32.mrb[18].mxu1 }
 0x487   : > { %v2641_v47 = vpop.f32.mrb[19].mxu1  ;;  %2713 = vmatmul.mubr.msk.f32.vlgmr.msra.gmra.mrb[14].mxu0 %vm422_vm0, %v1415_v46 }
 0x488   : > { %2715 = vmatprep.mubr.msk.f32.mxu0 %vm422_vm0, %v1488_v43 }
 0x48a   : > { %v1634_v49 = vpop.f32.mrb[10].mxu0 }
 0x48b   : > { %v2662_v50 = vpop.f32.mrb[11].mxu0 }
 0x48e   : > { %v1561_v51 = vpop.f32.mrb[20].mxu1 }
 0x48f   : > { %v2655_v52 = vpop.f32.mrb[21].mxu1  ;;  %2716 = vmatmul.mubr.msk.f32.gmra.mrb[16].mxu0 %vm422_vm0, %v1561_v51 }
 0x490   : > { %2718 = vmatprep.mubr.msk.f32.mxu0 %vm422_vm0, %v1634_v49 }
 0x492   : > { %v1780_v53 = vpop.f32.mrb[12].mxu0 }
 0x493   : > { %v2676_v54 = vpop.f32.mrb[13].mxu0 }
 0x496   : > { %v1707_v55 = vpop.f32.mrb[22].mxu1 }
 0x497   : > { %v2669_v56 = vpop.f32.mrb[23].mxu1  ;;  %2719 = vmatmul.mubr.msk.f32.gmra.mrb[18].mxu0 %vm422_vm0, %v1707_v55 }
 0x498   : > { %2721 = vmatprep.mubr.msk.f32.mxu0 %vm422_vm0, %v1780_v53 }
 0x49e   : > { %v1853_v57 = vpop.f32.mrb[24].mxu1 }
 0x49f   : > { %v2683_v58 = vpop.f32.mrb[25].mxu1  ;;  %2722 = vmatmul.mubr.msk.f32.gmra.mrb[20].mxu0 %vm422_vm0, %v1853_v57 }
 0x55a   : > { %v2714_v60 = vpop.f32.mrb[14].mxu0 }
 0x55b   : > { %v2107_v61 = vadd.f32 %v2714_v60, %v2456_v59  ;;  %v2061_v62 = vpop.f32.mrb[15].mxu0 }
 0x55c   : > { %v2106_v63 = vadd.f32 %v2456_v59, %v2061_v62 }
 0x55d   : > { %2943 = vtanh.f32 %v2107_v61 }
 0x55e   : > { %2945 = vtanh.f32 %v2106_v63 }
 0x562   : > { %v2717_v1 = vpop.f32.mrb[16].mxu0 }
 0x563   : > { %v2109_v2 = vadd.f32 %v2717_v1, %v2456_v59  ;;  %v2071_v3 = vpop.f32.mrb[17].mxu0 }
 0x564   : > { %v2108_v4 = vadd.f32 %v2456_v59, %v2071_v3 }
 0x565   : > { %2947 = vtanh.f32 %v2109_v2 }
 0x566   : > { %2949 = vtanh.f32 %v2108_v4 }
 0x567   : > { %v2944_v5 = vpop.eup %2943 }
 0x568   : > { %v2946_v7 = vpop.eup %2945  ;;  %2130 = vrot.lane.b32.xlu0 %v2944_v5, %s3225_s13 }
 0x569   : > { %2123 = vst.msk [vmem:[%s3793_s29] sm:$0xff] %vm422_vm0, %v2946_v7 }
 0x56a   : > { %v2720_v8 = vpop.f32.mrb[18].mxu0 }
 0x56b   : > { %v2111_v9 = vadd.f32 %v2720_v8, %v2456_v59  ;;  %v2081_v11 = vpop.f32.mrb[19].mxu0 }
 0x56c   : > { %v2110_v14 = vadd.f32 %v2456_v59, %v2081_v11 }
 0x56d   : > { %2951 = vtanh.f32 %v2111_v9 }
 0x56e   : > { %2953 = vtanh.f32 %v2110_v14 }
 0x56f   : > { %v2948_v15 = vpop.eup %2947 }
 0x570   : > { %v2950_v10 = vpop.eup %2949  ;;  %2152 = vrot.lane.b32.xlu0 %v2948_v15, %s3229_s11 }
 0x571   : > { %2141 = vrot.lane.b32.xlu1 %v2950_v10, %s3227_s14 }
 0x572   : > { %v2723_v18 = vpop.f32.mrb[20].mxu0 }
 0x573   : > { %v2113_v23 = vadd.f32 %v2723_v18, %v2456_v59  ;;  %v2091_v24 = vpop.f32.mrb[21].mxu0 }
 0x574   : > { %v2112_v30 = vadd.f32 %v2456_v59, %v2091_v24 }
 0x575   : > { %2955 = vtanh.f32 %v2113_v23 }
 0x576   : > { %2957 = vtanh.f32 %v2112_v30 }
 0x577   : > { %v2952_v25 = vpop.eup %2951 }
 0x578   : > { %v2954_v26 = vpop.eup %2953  ;;  %2169 = vrot.lane.b32.xlu0 %v2952_v25, %s3225_s13  ;;  %s3818_s13 = scalar_lea.hbm %s3903_s6, %s2467_s10 }
 0x579   : > { %2162 = vst.msk [vmem:[%s3793_s29 + $0x8] sm:$0xff] %vm422_vm0, %v2954_v26 }
 0x57f   : > { %v2956_v27 = vpop.eup %2955 }
 0x580   : > { %v2958_v28 = vpop.eup %2957  ;;  %2189 = vrot.lane.b32.xlu0 %v2956_v27, %s3229_s11  ;;  %s3103_s11 = scalar_lea.vmem %s3820_s0, 256 }
 0x581   : > { %2179 = vrot.lane.b32.xlu1 %v2958_v28, %s3227_s14  ;;  %s3829_s14 = scalar_lea.hbm %s3904_s7, %s2461_s3  ;;  %p3104_p2 = scmp.ne.s32.totalorder %s3820_s0, %s3103_s11 }
 0x582   : > { %p3111_p6 = scmp.lt.s32.totalorder %s3109_s12, %s3103_s11 }
 0x583   : > { %p3105_p4 = pnand %p3104_p2, %p3428_p5 }
 0x584   : > { %p3112_p10 = por %p3111_p6, %p3110_p8 }
 0x585   : > { %2183 = vrot.lane.b32.xlu1 %v3758_v37, %s3231_s20  ;;  %p3106_p0 = pneg %p3105_p4 }
 0x587   : > { %p3113_p3 = pnand %p3112_p10, %p3106_p0 }
 0x5da   : > { %v2131_v35 = vpop.permute.xlu0 %2130 }
 0x5db   : > { %2134 = vst.msk [vmem:[%s3793_s29] sm:$0xff] %vm2133_vm10, %v2131_v35 }
 0x5e2   : > { %v2153_v31 = vpop.permute.xlu0 %2152 }
 0x5e3   : > { %v2142_v29 = vpop.permute.xlu1 %2141 }
 0x5e4   : > { %2145 = vst.msk [vmem:[%s3793_s29] sm:$0xff] %vm2144_vm11, %v2142_v29 }
 0x5e5   : > { %2156 = vst.msk [vmem:[%s3793_s29] sm:$0xff] %vm2155_vm12, %v2153_v31 }
 0x5ea   : > { %v2170_v32 = vpop.permute.xlu0 %2169 }
 0x5eb   : > { %2172 = vst.msk [vmem:[%s3793_s29 + $0x8] sm:$0xff] %vm2133_vm10, %v2170_v32 }
 0x5f2   : > { %v2190_v33 = vpop.permute.xlu0 %2189 }
 0x5f3   : > { %v2180_v40 = vpop.permute.xlu1 %2179 }
 0x5f4   : > { %2182 = vst.msk [vmem:[%s3793_s29 + $0x8] sm:$0xff] %vm2144_vm11, %v2180_v40 }
 0x5f5   : > { %2192 = vst.msk [vmem:[%s3793_s29 + $0x8] sm:$0xff] %vm2155_vm12, %v2190_v33 }
 0x5f6   : > { %3116 = shalt.err (!%p3113_p3)
}
 0x5f7   : > { %s3117_s16 = scalar_lea.hbm %s3818_s13, 256  ;;  %s3121_s10 = scalar_lea.hbm %s3903_s6, 512 }
 0x5f8   : > { %p3118_p9 = scmp.ne.s32.totalorder %s3818_s13, %s3117_s16  ;;  %p3122_p7 = scmp.lt.u32.totalorder %s3818_s13, %s3903_s6 }
 0x5f9   : > { %p3123_p12 = scmp.lt.u32.totalorder %s3121_s10, %s3117_s16  ;;  %p3125_p2 = scmp.lt.u32.totalorder %s3117_s16, %s3818_s13 }
 0x5fa   : > { %p3119_p13 = pnand %p3118_p9, %p3428_p5 }
 0x5fb   : > { %p3124_p1 = por %p3123_p12, %p3122_p7 }
 0x5fc   : > { %p3120_p11 = pneg %p3119_p13 }
 0x5fd   : > { %p3126_p4 = por %p3125_p2, %p3124_p1 }
 0x5ff   : > { %p3127_p0 = pnand %p3126_p4, %p3120_p11 }
 0x601   : > { %3130 = shalt.err (!%p3127_p0)
}
 0x602   : > { %2828 = dma.vmem_to_hbm [thread:$0]  (%p3428_p5), %s3820_s0, 256, %s3818_s13, %s2194_s17   ;;  %v2184_v34 = vpop.permute.xlu1 %2183 }
 0x603   : > { %2187 = vst.msk [vmem:[%s3715_s8] sm:$0xff] %vm2186_vm13, %v2184_v34  ;;  %s2199_s30 = scalar_lea.sflag [#allocation13], %s3523_s4  ;;  %s3131_s21 = scalar_lea.vmem %s3831_s9, 128 }
 0x604   : > { %p3132_p8 = scmp.ne.s32.totalorder %s3831_s9, %s3131_s21  ;;  %s3233_s28 = smov [#allocation12]  }
 0x605   : > { %s3135_s11 = sshll.u32 %s3233_s28, 4  ;;  %s3136_s11 = int_to_ptr.vmem [resolvable:$false] %s3135_s11 }
 0x606   : > { %p3133_p6 = pnand %p3132_p8, %p3428_p5  ;;  %s3137_s2 = scalar_lea.vmem %s3136_s11, 256 }
 0x607   : > { %p3138_p3 = scmp.lt.s32.totalorder %s3831_s9, %s3136_s11  ;;  %p3139_p9 = scmp.lt.s32.totalorder %s3137_s2, %s3131_s21 }
 0x608   : > { %p3134_p10 = pneg %p3133_p6 }
 0x609   : > { %p3140_p13 = por %p3139_p9, %p3138_p3 }
 0x60b   : > { %p3141_p11 = pnand %p3140_p13, %p3134_p10 }
 0x60d   : > { %3144 = shalt.err (!%p3141_p11)
}
 0x60e   : > { %s3145_s4 = scalar_lea.hbm %s3829_s14, 128  ;;  %s3149_s13 = scalar_lea.hbm %s3904_s7, 256 }
 0x60f   : > { %p3146_p7 = scmp.ne.s32.totalorder %s3829_s14, %s3145_s4  ;;  %p3150_p2 = scmp.lt.u32.totalorder %s3829_s14, %s3904_s7 }
 0x610   : > { %p3151_p4 = scmp.lt.u32.totalorder %s3149_s13, %s3145_s4  ;;  %p3153_p8 = scmp.lt.u32.totalorder %s3145_s4, %s3829_s14 }
 0x611   : > { %p3147_p12 = pnand %p3146_p7, %p3428_p5 }
 0x612   : > { %p3152_p0 = por %p3151_p4, %p3150_p2 }
 0x613   : > { %p3148_p1 = pneg %p3147_p12 }
 0x614   : > { %p3154_p6 = por %p3153_p8, %p3152_p0 }
 0x616   : > { %p3155_p10 = pnand %p3154_p6, %p3148_p1 }
 0x618   : > { %3158 = shalt.err (!%p3155_p10)
}
 0x619   : > { %2829 = dma.vmem_to_hbm [thread:$0]  (%p3428_p5), %s3831_s9, 128, %s3829_s14, %s2199_s30  }
 0x61a PF: > { %s3938_s12 = sld [smem:[#allocation20_spill]]  ;;  %s2238_s16 = sand.u32 1, %s3201_s24  }
 0x61b   : > { %p3940_p9 = scmp.ge.s32.totalorder %s3213_s27, 2  ;;  %s2239_s29 = scalar_lea.sflag [#allocation4], %s2238_s16 }
 0x620   : > { %p3939_p3 = scmp.ne.s32.totalorder %s3938_s12, 0 }
 0x622   : > { %p2850_p13 = pnand %p3940_p9, %p3939_p3 }
 0x624   : > { %3192 = dma.done.wait (!%p2850_p13), %s2239_s29, 256  }
 0x625   : > { %3194 = vsyncadd (!%p2850_p13), %s2239_s29, 4294967040  ;;  %s2248_s20 = scalar_lea.sflag [#allocation13], %s2238_s16 }
 0x626   : > { %3196 = dma.done.wait (!%p2850_p13), %s2248_s20, 128  }
 0x627   : > { %3198 = vsyncadd (!%p2850_p13), %s2248_s20, 4294967168  ;;  %p28_p5 = scmp.ge.s32.totalorder %s3414_s22, 4   ;;  %s3941_s24 = smov %s3205_s25 }
 0x628   : > { %s3942_s25 = smov %s3209_s26  ;;  %s3943_s26 = smov %s3424_s18 }
 0x629   : > { %s3944_s27 = smov %s3414_s22  ;;  %30 = sbr.rel (!%p28_p5) target bundleno = 15 (0xf), region = 131 }
 0x630   :  { %2253 = vsyncpa [#allocation3], 1 }
 0x631   :  { %2255 = vsyncpa [#allocation3 + $0x1], 1 }
 0x632   :  { %2256 = vsyncpa [#allocation6], 1 }
 0x633   :  { %2258 = vsyncpa [#allocation6 + $0x1], 1 }
 0x634   :  { %2259 = vsyncpa [#allocation9], 1 }
 0x635   :  { %2260 = vsyncpa [#allocation4], 1 }
 0x636   :  { %2262 = vsyncpa [#allocation4 + $0x1], 1 }
 0x637   :  { %2263 = vsyncpa [#allocation13], 1 }
 0x638   :  { %2265 = vsyncpa [#allocation13 + $0x1], 1 }

</bundles_post_ra>
